<compile_context>
chip_gen: v6e
topology: v6e:2x2x1
jax: 0.10.0
libtpu: 0.0.40
codegen_flags: <defaults>
</compile_context>

<pallas_src>
import jax
import jax.numpy as jnp
import numpy as np
from jax.experimental import pallas as pl
from jax.experimental.pallas import tpu as pltpu

NUM_LAYERS = 4
EMB = 32          # emb_dim d
IN_DIM = 11       # node feature dim d_n
EDGE_DIM = 4      # edge feature dim d_e


# ---------------------------------------------------------------------------
# Pallas kernel: full MPNNModel forward for one graph-block per grid step
# ---------------------------------------------------------------------------
def mpnn_kernel(
    x_ref, ea_ref, gsrc_ref, gdst_ref, pool_ref,
    lin_in_w_ref, lin_in_b_ref,
    msg_wa_ref, msg_wb_ref, msg_we_ref, msg_b1_ref,
    msg_w2_ref, msg_b2_ref,
    upd_wh_ref, upd_wa_ref, upd_b1_ref,
    upd_w2_ref, upd_b2_ref,
    pred_wt_ref, pred_b_ref,
    out_ref,
):
    dot = lambda a, b: jnp.dot(a, b, preferred_element_type=jnp.float32)
    TN = (((0,), (0,)), ((), ()))   # lhs-transposed contraction (scatter-add)
    NT = (((1,), (1,)), ((), ()))   # rhs-transposed contraction (lane-dense head)

    x = x_ref[0]          # (n, in_dim)  — one graph-block per grid step
    ea = ea_ref[0]        # (e, edge_dim)
    gsrc = gsrc_ref[0]    # (e, n) one-hot of source node j
    gdst = gdst_ref[0]    # (e, n) one-hot of destination node i

    # lin_in
    h = dot(x, lin_in_w_ref[...]) + lin_in_b_ref[...]            # (n, d)

    # Static unroll over layers: per-layer weights are statically indexed so the
    # whole body is straight-line code for the LLO scheduler.
    for l in range(NUM_LAYERS):
        # ---- message(): psi(cat[h_i, h_j, edge_attr]) -------------------
        # Layer-1 projections done once per node (associativity, n < e), then
        # gathered per edge with one-hot matmuls.  BatchNorm is pre-folded.
        hwa = dot(h, msg_wa_ref[l])                              # (n, d)
        hwb = dot(h, msg_wb_ref[l])                              # (n, d)
        edge_term = dot(ea, msg_we_ref[l]) + msg_b1_ref[l]       # (e, d)
        z = dot(gdst, hwa) + dot(gsrc, hwb) + edge_term          # (e, d)
        z = jnp.maximum(z, 0.0)
        msg = jnp.maximum(dot(z, msg_w2_ref[l]) + msg_b2_ref[l], 0.0)

        # ---- aggregate(): scatter-add onto destinations = gdst^T @ msg --
        aggr = jax.lax.dot_general(gdst, msg, TN,
                                   preferred_element_type=jnp.float32)  # (n, d)

        # ---- update(): phi(cat[h, aggr]) ---------------------------------
        z = dot(h, upd_wh_ref[l]) + dot(aggr, upd_wa_ref[l]) + upd_b1_ref[l]
        z = jnp.maximum(z, 0.0)
        upd = jnp.maximum(dot(z, upd_w2_ref[l]) + upd_b2_ref[l], 0.0)

        # residual in MPNNModel.forward: h = h + conv(h, ...)
        h = h + upd

    # global mean pool + lin_pred, written lane-dense as (1, g)
    h_graph = dot(pool_ref[0], h)                                # (g, d)
    out = jax.lax.dot_general(pred_wt_ref[...], h_graph, NT,
                              preferred_element_type=jnp.float32)  # (1, g)
    out_ref[0] = out + pred_b_ref[...]


PARAM_ORDER = [
    "lin_in_w", "lin_in_b",
    "msg_wa", "msg_wb", "msg_we", "msg_b1", "msg_w2", "msg_b2",
    "upd_wh", "upd_wa", "upd_b1", "upd_w2", "upd_b2",
    "pred_wt", "pred_b",
]


def mpnn_forward(x, edge_attr, gsrc, gdst, pool_mat, params):
    """x:(B,n,d_n)  edge_attr:(B,e,d_e)  gsrc/gdst:(B,e,n)  pool_mat:(B,g,n)."""
    B, n, _ = x.shape
    e = edge_attr.shape[1]
    g = pool_mat.shape[1]
    D = EMB

    def blk(shape):                     # per graph-block input: pipelined over grid
        nd = len(shape)
        return pl.BlockSpec((1,) + shape, lambda b, _nd=nd: (b,) + (0,) * _nd)

    def full(arr):                      # weights: whole array, resident in VMEM
        nd = arr.ndim                   # constant index_map -> no re-DMA per step
        return pl.BlockSpec(arr.shape, lambda b, _nd=nd: (0,) * _nd)

    data = [x, edge_attr, gsrc, gdst, pool_mat]
    weights = [params[k] for k in PARAM_ORDER]
    in_specs = ([blk((n, IN_DIM)), blk((e, EDGE_DIM)), blk((e, n)), blk((e, n)),
                 blk((g, n))] + [full(w) for w in weights])

    # advisory cost estimate so XLA schedules the custom call sensibly
    flops = 2 * B * (
        n * IN_DIM * D
        + NUM_LAYERS * (2 * n * D * D          # node-side message projections
                        + 2 * e * n * D        # per-edge one-hot gathers
                        + e * EDGE_DIM * D     # edge-feature projection
                        + e * D * D            # message MLP layer 2
                        + n * e * D            # scatter-add
                        + 3 * n * D * D)       # update MLP
        + g * n * D + g * D)
    bytes_accessed = 4 * (sum(int(np.prod(a.shape)) for a in data + weights)
                          + B * g)

    out = pl.pallas_call(
        mpnn_kernel,
        grid=(B,),
        out_shape=jax.ShapeDtypeStruct((B, 1, g), jnp.float32),
        in_specs=in_specs,
        out_specs=blk((1, g)),
        compiler_params=pltpu.CompilerParams(
            dimension_semantics=("parallel",)),   # shard graph-blocks across TCs
        cost_estimate=pl.CostEstimate(flops=flops, transcendentals=0,
                                      bytes_accessed=bytes_accessed),
    )(*data, *weights)
    return out.reshape(-1)              # .view(-1)


# ---------------------------------------------------------------------------
# Parameter init (raw PyTorch-like params) + host-side BN folding / splitting
# ---------------------------------------------------------------------------
def _bn_params(key, d, L):
    kg, kb, km, kv = jax.random.split(key, 4)
    gamma = 1.0 + 0.1 * jax.random.normal(kg, (L, 1, d), jnp.float32)
    beta = 0.1 * jax.random.normal(kb, (L, 1, d), jnp.float32)
    mean = 0.1 * jax.random.normal(km, (L, 1, d), jnp.float32)
    var = jax.random.uniform(kv, (L, 1, d), jnp.float32, 0.5, 1.5)
    return gamma, beta, mean, var


def init_params(key):
    D, E, L = EMB, EDGE_DIM, NUM_LAYERS
    ks = jax.random.split(key, 16)
    p = {}
    p["lin_in_w"] = 0.2 * jax.random.normal(ks[0], (IN_DIM, D), jnp.float32)
    p["lin_in_b"] = 0.1 * jax.random.normal(ks[1], (1, D), jnp.float32)

    p["msg_w1"] = 0.2 * jax.random.normal(ks[2], (L, 2 * D + E, D), jnp.float32)
    p["msg_b1"] = 0.1 * jax.random.normal(ks[3], (L, 1, D), jnp.float32)
    p["msg_g1"], p["msg_be1"], p["msg_m1"], p["msg_v1"] = _bn_params(ks[4], D, L)
    p["msg_w2"] = 0.2 * jax.random.normal(ks[5], (L, D, D), jnp.float32)
    p["msg_b2"] = 0.1 * jax.random.normal(ks[6], (L, 1, D), jnp.float32)
    p["msg_g2"], p["msg_be2"], p["msg_m2"], p["msg_v2"] = _bn_params(ks[7], D, L)

    p["upd_w1"] = 0.2 * jax.random.normal(ks[8], (L, 2 * D, D), jnp.float32)
    p["upd_b1"] = 0.1 * jax.random.normal(ks[9], (L, 1, D), jnp.float32)
    p["upd_g1"], p["upd_be1"], p["upd_m1"], p["upd_v1"] = _bn_params(ks[10], D, L)
    p["upd_w2"] = 0.2 * jax.random.normal(ks[11], (L, D, D), jnp.float32)
    p["upd_b2"] = 0.1 * jax.random.normal(ks[12], (L, 1, D), jnp.float32)
    p["upd_g2"], p["upd_be2"], p["upd_m2"], p["upd_v2"] = _bn_params(ks[13], D, L)

    p["pred_w"] = 0.2 * jax.random.normal(ks[14], (D, 1), jnp.float32)
    p["pred_b"] = 0.1 * jax.random.normal(ks[15], (1, 1), jnp.float32)
    return p


def fold_params(p):
    """Host-side transform: fold eval-mode BatchNorm into preceding Linears,
    pre-split concatenated input weights, pre-transpose the prediction head."""
    D = EMB
    eps = 1e-5

    def fold(w, b, gamma, beta, mean, var):
        s = gamma / jnp.sqrt(var + eps)          # (L,1,D) per-feature scale
        t = beta - mean * s
        return w * s, b * s + t                  # scale output columns of W

    q = {"lin_in_w": p["lin_in_w"], "lin_in_b": p["lin_in_b"]}

    w1, b1 = fold(p["msg_w1"], p["msg_b1"], p["msg_g1"], p["msg_be1"],
                  p["msg_m1"], p["msg_v1"])
    q["msg_wa"], q["msg_wb"], q["msg_we"] = w1[:, :D], w1[:, D:2 * D], w1[:, 2 * D:]
    q["msg_b1"] = b1
    q["msg_w2"], q["msg_b2"] = fold(p["msg_w2"], p["msg_b2"], p["msg_g2"],
                                    p["msg_be2"], p["msg_m2"], p["msg_v2"])

    w1, b1 = fold(p["upd_w1"], p["upd_b1"], p["upd_g1"], p["upd_be1"],
                  p["upd_m1"], p["upd_v1"])
    q["upd_wh"], q["upd_wa"] = w1[:, :D], w1[:, D:]
    q["upd_b1"] = b1
    q["upd_w2"], q["upd_b2"] = fold(p["upd_w2"], p["upd_b2"], p["upd_g2"],
                                    p["upd_be2"], p["upd_m2"], p["upd_v2"])

    q["pred_wt"] = p["pred_w"].T                 # (1, D) lane-dense head
    q["pred_b"] = p["pred_b"]                    # (1, 1)
    return q


# ---------------------------------------------------------------------------
# Pure-JAX reference (unfolded BN, exact gather/scatter, high precision)
# ---------------------------------------------------------------------------
def reference(x, edge_attr, src, dst, batch, n_graphs, p):
    hp = jax.lax.Precision.HIGHEST
    dot = lambda a, b: jnp.dot(a, b, precision=hp)
    eps = 1e-5

    def bn(z, l, g, b, m, v):
        return (z - m[l]) / jnp.sqrt(v[l] + eps) * g[l] + b[l]

    h = dot(x, p["lin_in_w"]) + p["lin_in_b"]
    for l in range(NUM_LAYERS):
        h_i = h[dst]                              # destination node features
        h_j = h[src]                              # source node features
        m_in = jnp.concatenate([h_i, h_j, edge_attr], axis=-1)
        z = dot(m_in, p["msg_w1"][l]) + p["msg_b1"][l]
        z = jnp.maximum(bn(z, l, p["msg_g1"], p["msg_be1"], p["msg_m1"], p["msg_v1"]), 0.0)
        z = dot(z, p["msg_w2"][l]) + p["msg_b2"][l]
        msg = jnp.maximum(bn(z, l, p["msg_g2"], p["msg_be2"], p["msg_m2"], p["msg_v2"]), 0.0)
        aggr = jnp.zeros_like(h).at[dst].add(msg)
        u_in = jnp.concatenate([h, aggr], axis=-1)
        z = dot(u_in, p["upd_w1"][l]) + p["upd_b1"][l]
        z = jnp.maximum(bn(z, l, p["upd_g1"], p["upd_be1"], p["upd_m1"], p["upd_v1"]), 0.0)
        z = dot(z, p["upd_w2"][l]) + p["upd_b2"][l]
        upd = jnp.maximum(bn(z, l, p["upd_g2"], p["upd_be2"], p["upd_m2"], p["upd_v2"]), 0.0)
        h = h + upd

    counts = jnp.zeros((n_graphs,), jnp.float32).at[batch].add(1.0)
    h_graph = jnp.zeros((n_graphs, EMB), jnp.float32).at[batch].add(h)
    h_graph = h_graph / jnp.maximum(counts, 1.0)[:, None]
    return (dot(h_graph, p["pred_w"]) + p["pred_b"]).reshape(-1)


# ---------------------------------------------------------------------------
if __name__ == "__main__":
    B = 2                                   # graph-blocks per call (grid axis)
    N, N_EDGES, N_GRAPHS = 16, 32, 2        # per block

    key = jax.random.PRNGKey(0)
    kdata, kparam = jax.random.split(key)

    xs, eas, gsrcs, gdsts, pools, srcs, dsts, batches = [], [], [], [], [], [], [], []
    for kb in jax.random.split(kdata, B):
        kx, ke, ksrc, kdst = jax.random.split(kb, 4)
        x = jax.random.normal(kx, (N, IN_DIM), jnp.float32)
        ea = jax.random.normal(ke, (N_EDGES, EDGE_DIM), jnp.float32)
        src = jax.random.randint(ksrc, (N_EDGES,), 0, N)   # edge_index[0] (j)
        dst = jax.random.randint(kdst, (N_EDGES,), 0, N)   # edge_index[1] (i)
        batch = jnp.concatenate([jnp.zeros(N // 2, jnp.int32),
                                 jnp.ones(N // 2, jnp.int32)])
        gsrc = jax.nn.one_hot(src, N, dtype=jnp.float32)   # (e, n)
        gdst = jax.nn.one_hot(dst, N, dtype=jnp.float32)   # (e, n)
        oh_b = jax.nn.one_hot(batch, N_GRAPHS, dtype=jnp.float32)      # (n, g)
        counts = jnp.maximum(oh_b.sum(axis=0, keepdims=True), 1.0)     # empty-graph guard
        pool = (oh_b / counts).T                                       # (g, n)
        xs.append(x); eas.append(ea); gsrcs.append(gsrc); gdsts.append(gdst)
        pools.append(pool); srcs.append(src); dsts.append(dst); batches.append(batch)

    x_b = jnp.stack(xs); ea_b = jnp.stack(eas)
    gsrc_b = jnp.stack(gsrcs); gdst_b = jnp.stack(gdsts); pool_b = jnp.stack(pools)

    raw = init_params(kparam)
    params = fold_params(raw)

    out = mpnn_forward(x_b, ea_b, gsrc_b, gdst_b, pool_b, params)
    out = jax.block_until_ready(out)

    ref = jnp.concatenate([
        reference(xs[b], eas[b], srcs[b], dsts[b], batches[b], N_GRAPHS, raw)
        for b in range(B)])

    np.testing.assert_allclose(np.asarray(out), np.asarray(ref),
                               rtol=2e-2, atol=2e-2)
    assert out.shape == (B * N_GRAPHS,)
    print("KERNEL_OK")
</pallas_src>

<mosaic_0001>
module attributes {stable_mosaic.version = 11 : i64} {
  func.func @mpnn_kernel(%arg0: i32, %arg1: memref<1x16x11xf32, #tpu.memory_space<vmem>>, %arg2: memref<1x32x4xf32, #tpu.memory_space<vmem>>, %arg3: memref<1x32x16xf32, #tpu.memory_space<vmem>>, %arg4: memref<1x32x16xf32, #tpu.memory_space<vmem>>, %arg5: memref<1x2x16xf32, #tpu.memory_space<vmem>>, %arg6: memref<11x32xf32, #tpu.memory_space<vmem>>, %arg7: memref<1x32xf32, #tpu.memory_space<vmem>>, %arg8: memref<4x32x32xf32, #tpu.memory_space<vmem>>, %arg9: memref<4x32x32xf32, #tpu.memory_space<vmem>>, %arg10: memref<4x4x32xf32, #tpu.memory_space<vmem>>, %arg11: memref<4x1x32xf32, #tpu.memory_space<vmem>>, %arg12: memref<4x32x32xf32, #tpu.memory_space<vmem>>, %arg13: memref<4x1x32xf32, #tpu.memory_space<vmem>>, %arg14: memref<4x32x32xf32, #tpu.memory_space<vmem>>, %arg15: memref<4x32x32xf32, #tpu.memory_space<vmem>>, %arg16: memref<4x1x32xf32, #tpu.memory_space<vmem>>, %arg17: memref<4x32x32xf32, #tpu.memory_space<vmem>>, %arg18: memref<4x1x32xf32, #tpu.memory_space<vmem>>, %arg19: memref<1x32xf32, #tpu.memory_space<vmem>>, %arg20: memref<1x1xf32, #tpu.memory_space<vmem>>, %arg21: memref<1x1x2xf32, #tpu.memory_space<vmem>>) attributes {dimension_semantics = [#tpu.dimension_semantics<parallel>], iteration_bounds = array<i64: 2>, scalar_prefetch = 0 : i64, scratch_operands = 0 : i64, tpu.core_type = #tpu.core_type<tc>, window_params = [{transform_indices = @transform_0, window_bounds = array<i64: 1, 16, 11>}, {transform_indices = @transform_1, window_bounds = array<i64: 1, 32, 4>}, {transform_indices = @transform_2, window_bounds = array<i64: 1, 32, 16>}, {transform_indices = @transform_3, window_bounds = array<i64: 1, 32, 16>}, {transform_indices = @transform_4, window_bounds = array<i64: 1, 2, 16>}, {pipeline_mode = #tpu.pipeline_mode<synchronous>, transform_indices = @transform_5, window_bounds = array<i64: 11, 32>}, {pipeline_mode = #tpu.pipeline_mode<synchronous>, transform_indices = @transform_6, window_bounds = array<i64: 1, 32>}, {pipeline_mode = #tpu.pipeline_mode<synchronous>, transform_indices = @transform_7, window_bounds = array<i64: 4, 32, 32>}, {pipeline_mode = #tpu.pipeline_mode<synchronous>, transform_indices = @transform_8, window_bounds = array<i64: 4, 32, 32>}, {pipeline_mode = #tpu.pipeline_mode<synchronous>, transform_indices = @transform_9, window_bounds = array<i64: 4, 4, 32>}, {pipeline_mode = #tpu.pipeline_mode<synchronous>, transform_indices = @transform_10, window_bounds = array<i64: 4, 1, 32>}, {pipeline_mode = #tpu.pipeline_mode<synchronous>, transform_indices = @transform_11, window_bounds = array<i64: 4, 32, 32>}, {pipeline_mode = #tpu.pipeline_mode<synchronous>, transform_indices = @transform_12, window_bounds = array<i64: 4, 1, 32>}, {pipeline_mode = #tpu.pipeline_mode<synchronous>, transform_indices = @transform_13, window_bounds = array<i64: 4, 32, 32>}, {pipeline_mode = #tpu.pipeline_mode<synchronous>, transform_indices = @transform_14, window_bounds = array<i64: 4, 32, 32>}, {pipeline_mode = #tpu.pipeline_mode<synchronous>, transform_indices = @transform_15, window_bounds = array<i64: 4, 1, 32>}, {pipeline_mode = #tpu.pipeline_mode<synchronous>, transform_indices = @transform_16, window_bounds = array<i64: 4, 32, 32>}, {pipeline_mode = #tpu.pipeline_mode<synchronous>, transform_indices = @transform_17, window_bounds = array<i64: 4, 1, 32>}, {pipeline_mode = #tpu.pipeline_mode<synchronous>, transform_indices = @transform_18, window_bounds = array<i64: 1, 32>}, {pipeline_mode = #tpu.pipeline_mode<synchronous>, transform_indices = @transform_19, window_bounds = array<i64: 1, 1>}, {transform_indices = @transform_20, window_bounds = array<i64: 1, 1, 2>}]} {
    %c0 = arith.constant 0 : index
    %c0_0 = arith.constant 0 : index
    %c0_1 = arith.constant 0 : index
    %0 = vector.load %arg1[%c0, %c0_0, %c0_1] : memref<1x16x11xf32, #tpu.memory_space<vmem>>, vector<1x16x11xf32>
    %1 = vector.shape_cast %0 : vector<1x16x11xf32> to vector<16x11xf32>
    %c0_2 = arith.constant 0 : index
    %c0_3 = arith.constant 0 : index
    %c0_4 = arith.constant 0 : index
    %2 = vector.load %arg2[%c0_2, %c0_3, %c0_4] : memref<1x32x4xf32, #tpu.memory_space<vmem>>, vector<1x32x4xf32>
    %3 = vector.shape_cast %2 : vector<1x32x4xf32> to vector<32x4xf32>
    %c0_5 = arith.constant 0 : index
    %c0_6 = arith.constant 0 : index
    %c0_7 = arith.constant 0 : index
    %4 = vector.load %arg3[%c0_5, %c0_6, %c0_7] : memref<1x32x16xf32, #tpu.memory_space<vmem>>, vector<1x32x16xf32>
    %5 = vector.shape_cast %4 : vector<1x32x16xf32> to vector<32x16xf32>
    %c0_8 = arith.constant 0 : index
    %c0_9 = arith.constant 0 : index
    %c0_10 = arith.constant 0 : index
    %6 = vector.load %arg4[%c0_8, %c0_9, %c0_10] : memref<1x32x16xf32, #tpu.memory_space<vmem>>, vector<1x32x16xf32>
    %7 = vector.shape_cast %6 : vector<1x32x16xf32> to vector<32x16xf32>
    %c0_11 = arith.constant 0 : index
    %c0_12 = arith.constant 0 : index
    %8 = vector.load %arg6[%c0_11, %c0_12] : memref<11x32xf32, #tpu.memory_space<vmem>>, vector<11x32xf32>
    %cst = arith.constant dense<0.000000e+00> : vector<16x32xf32>
    %9 = tpu.matmul %1, %8, %cst {dimension_numbers = #tpu.dot_dimension_numbers<[1], [0], [0], [1], [0, 0, 1, 1], [], []>} : vector<16x11xf32>, vector<11x32xf32>, vector<16x32xf32> -> vector<16x32xf32>
    %c0_13 = arith.constant 0 : index
    %c0_14 = arith.constant 0 : index
    %10 = vector.load %arg7[%c0_13, %c0_14] : memref<1x32xf32, #tpu.memory_space<vmem>>, vector<1x32xf32>
    %11 = vector.broadcast %10 : vector<1x32xf32> to vector<16x32xf32>
    %12 = arith.addf %9, %11 : vector<16x32xf32>
    %c0_15 = arith.constant 0 : index
    %c0_16 = arith.constant 0 : index
    %c0_17 = arith.constant 0 : index
    %13 = vector.load %arg8[%c0_15, %c0_16, %c0_17] : memref<4x32x32xf32, #tpu.memory_space<vmem>>, vector<1x32x32xf32>
    %14 = vector.shape_cast %13 : vector<1x32x32xf32> to vector<32x32xf32>
    %cst_18 = arith.constant dense<0.000000e+00> : vector<16x32xf32>
    %15 = tpu.matmul %12, %14, %cst_18 {dimension_numbers = #tpu.dot_dimension_numbers<[1], [0], [0], [1], [0, 0, 1, 1], [], []>} : vector<16x32xf32>, vector<32x32xf32>, vector<16x32xf32> -> vector<16x32xf32>
    %c0_19 = arith.constant 0 : index
    %c0_20 = arith.constant 0 : index
    %c0_21 = arith.constant 0 : index
    %16 = vector.load %arg9[%c0_19, %c0_20, %c0_21] : memref<4x32x32xf32, #tpu.memory_space<vmem>>, vector<1x32x32xf32>
    %17 = vector.shape_cast %16 : vector<1x32x32xf32> to vector<32x32xf32>
    %cst_22 = arith.constant dense<0.000000e+00> : vector<16x32xf32>
    %18 = tpu.matmul %12, %17, %cst_22 {dimension_numbers = #tpu.dot_dimension_numbers<[1], [0], [0], [1], [0, 0, 1, 1], [], []>} : vector<16x32xf32>, vector<32x32xf32>, vector<16x32xf32> -> vector<16x32xf32>
    %c0_23 = arith.constant 0 : index
    %c0_24 = arith.constant 0 : index
    %c0_25 = arith.constant 0 : index
    %19 = vector.load %arg10[%c0_23, %c0_24, %c0_25] : memref<4x4x32xf32, #tpu.memory_space<vmem>>, vector<1x4x32xf32>
    %20 = vector.shape_cast %19 : vector<1x4x32xf32> to vector<4x32xf32>
    %cst_26 = arith.constant dense<0.000000e+00> : vector<32x32xf32>
    %21 = tpu.matmul %3, %20, %cst_26 {dimension_numbers = #tpu.dot_dimension_numbers<[1], [0], [0], [1], [0, 0, 1, 1], [], []>} : vector<32x4xf32>, vector<4x32xf32>, vector<32x32xf32> -> vector<32x32xf32>
    %c0_27 = arith.constant 0 : index
    %c0_28 = arith.constant 0 : index
    %c0_29 = arith.constant 0 : index
    %22 = vector.load %arg11[%c0_27, %c0_28, %c0_29] : memref<4x1x32xf32, #tpu.memory_space<vmem>>, vector<1x1x32xf32>
    %23 = vector.shape_cast %22 : vector<1x1x32xf32> to vector<1x32xf32>
    %24 = vector.broadcast %23 : vector<1x32xf32> to vector<32x32xf32>
    %25 = arith.addf %21, %24 : vector<32x32xf32>
    %cst_30 = arith.constant dense<0.000000e+00> : vector<32x32xf32>
    %26 = tpu.matmul %7, %15, %cst_30 {dimension_numbers = #tpu.dot_dimension_numbers<[1], [0], [0], [1], [0, 0, 1, 1], [], []>} : vector<32x16xf32>, vector<16x32xf32>, vector<32x32xf32> -> vector<32x32xf32>
    %cst_31 = arith.constant dense<0.000000e+00> : vector<32x32xf32>
    %27 = tpu.matmul %5, %18, %cst_31 {dimension_numbers = #tpu.dot_dimension_numbers<[1], [0], [0], [1], [0, 0, 1, 1], [], []>} : vector<32x16xf32>, vector<16x32xf32>, vector<32x32xf32> -> vector<32x32xf32>
    %28 = arith.addf %26, %27 : vector<32x32xf32>
    %29 = arith.addf %28, %25 : vector<32x32xf32>
    %cst_32 = arith.constant 0.000000e+00 : f32
    %30 = vector.broadcast %cst_32 : f32 to vector<32x32xf32>
    %31 = arith.maximumf %29, %30 : vector<32x32xf32>
    %c0_33 = arith.constant 0 : index
    %c0_34 = arith.constant 0 : index
    %c0_35 = arith.constant 0 : index
    %32 = vector.load %arg12[%c0_33, %c0_34, %c0_35] : memref<4x32x32xf32, #tpu.memory_space<vmem>>, vector<1x32x32xf32>
    %33 = vector.shape_cast %32 : vector<1x32x32xf32> to vector<32x32xf32>
    %cst_36 = arith.constant dense<0.000000e+00> : vector<32x32xf32>
    %34 = tpu.matmul %31, %33, %cst_36 {dimension_numbers = #tpu.dot_dimension_numbers<[1], [0], [0], [1], [0, 0, 1, 1], [], []>} : vector<32x32xf32>, vector<32x32xf32>, vector<32x32xf32> -> vector<32x32xf32>
    %c0_37 = arith.constant 0 : index
    %c0_38 = arith.constant 0 : index
    %c0_39 = arith.constant 0 : index
    %35 = vector.load %arg13[%c0_37, %c0_38, %c0_39] : memref<4x1x32xf32, #tpu.memory_space<vmem>>, vector<1x1x32xf32>
    %36 = vector.shape_cast %35 : vector<1x1x32xf32> to vector<1x32xf32>
    %37 = vector.broadcast %36 : vector<1x32xf32> to vector<32x32xf32>
    %38 = arith.addf %34, %37 : vector<32x32xf32>
    %cst_40 = arith.constant 0.000000e+00 : f32
    %39 = vector.broadcast %cst_40 : f32 to vector<32x32xf32>
    %40 = arith.maximumf %38, %39 : vector<32x32xf32>
    %cst_41 = arith.constant dense<0.000000e+00> : vector<16x32xf32>
    %41 = tpu.matmul %7, %40, %cst_41 {dimension_numbers = #tpu.dot_dimension_numbers<[0], [0], [1], [1], [0, 1, 1, 1], [], []>} : vector<32x16xf32>, vector<32x32xf32>, vector<16x32xf32> -> vector<16x32xf32>
    %c0_42 = arith.constant 0 : index
    %c0_43 = arith.constant 0 : index
    %c0_44 = arith.constant 0 : index
    %42 = vector.load %arg14[%c0_42, %c0_43, %c0_44] : memref<4x32x32xf32, #tpu.memory_space<vmem>>, vector<1x32x32xf32>
    %43 = vector.shape_cast %42 : vector<1x32x32xf32> to vector<32x32xf32>
    %cst_45 = arith.constant dense<0.000000e+00> : vector<16x32xf32>
    %44 = tpu.matmul %12, %43, %cst_45 {dimension_numbers = #tpu.dot_dimension_numbers<[1], [0], [0], [1], [0, 0, 1, 1], [], []>} : vector<16x32xf32>, vector<32x32xf32>, vector<16x32xf32> -> vector<16x32xf32>
    %c0_46 = arith.constant 0 : index
    %c0_47 = arith.constant 0 : index
    %c0_48 = arith.constant 0 : index
    %45 = vector.load %arg15[%c0_46, %c0_47, %c0_48] : memref<4x32x32xf32, #tpu.memory_space<vmem>>, vector<1x32x32xf32>
    %46 = vector.shape_cast %45 : vector<1x32x32xf32> to vector<32x32xf32>
    %cst_49 = arith.constant dense<0.000000e+00> : vector<16x32xf32>
    %47 = tpu.matmul %41, %46, %cst_49 {dimension_numbers = #tpu.dot_dimension_numbers<[1], [0], [0], [1], [0, 0, 1, 1], [], []>} : vector<16x32xf32>, vector<32x32xf32>, vector<16x32xf32> -> vector<16x32xf32>
    %48 = arith.addf %44, %47 : vector<16x32xf32>
    %c0_50 = arith.constant 0 : index
    %c0_51 = arith.constant 0 : index
    %c0_52 = arith.constant 0 : index
    %49 = vector.load %arg16[%c0_50, %c0_51, %c0_52] : memref<4x1x32xf32, #tpu.memory_space<vmem>>, vector<1x1x32xf32>
    %50 = vector.shape_cast %49 : vector<1x1x32xf32> to vector<1x32xf32>
    %51 = vector.broadcast %50 : vector<1x32xf32> to vector<16x32xf32>
    %52 = arith.addf %48, %51 : vector<16x32xf32>
    %cst_53 = arith.constant 0.000000e+00 : f32
    %53 = vector.broadcast %cst_53 : f32 to vector<16x32xf32>
    %54 = arith.maximumf %52, %53 : vector<16x32xf32>
    %c0_54 = arith.constant 0 : index
    %c0_55 = arith.constant 0 : index
    %c0_56 = arith.constant 0 : index
    %55 = vector.load %arg17[%c0_54, %c0_55, %c0_56] : memref<4x32x32xf32, #tpu.memory_space<vmem>>, vector<1x32x32xf32>
    %56 = vector.shape_cast %55 : vector<1x32x32xf32> to vector<32x32xf32>
    %cst_57 = arith.constant dense<0.000000e+00> : vector<16x32xf32>
    %57 = tpu.matmul %54, %56, %cst_57 {dimension_numbers = #tpu.dot_dimension_numbers<[1], [0], [0], [1], [0, 0, 1, 1], [], []>} : vector<16x32xf32>, vector<32x32xf32>, vector<16x32xf32> -> vector<16x32xf32>
    %c0_58 = arith.constant 0 : index
    %c0_59 = arith.constant 0 : index
    %c0_60 = arith.constant 0 : index
    %58 = vector.load %arg18[%c0_58, %c0_59, %c0_60] : memref<4x1x32xf32, #tpu.memory_space<vmem>>, vector<1x1x32xf32>
    %59 = vector.shape_cast %58 : vector<1x1x32xf32> to vector<1x32xf32>
    %60 = vector.broadcast %59 : vector<1x32xf32> to vector<16x32xf32>
    %61 = arith.addf %57, %60 : vector<16x32xf32>
    %cst_61 = arith.constant 0.000000e+00 : f32
    %62 = vector.broadcast %cst_61 : f32 to vector<16x32xf32>
    %63 = arith.maximumf %61, %62 : vector<16x32xf32>
    %64 = arith.addf %12, %63 : vector<16x32xf32>
    %c1 = arith.constant 1 : index
    %c0_62 = arith.constant 0 : index
    %c0_63 = arith.constant 0 : index
    %65 = vector.load %arg8[%c1, %c0_62, %c0_63] : memref<4x32x32xf32, #tpu.memory_space<vmem>>, vector<1x32x32xf32>
    %66 = vector.shape_cast %65 : vector<1x32x32xf32> to vector<32x32xf32>
    %cst_64 = arith.constant dense<0.000000e+00> : vector<16x32xf32>
    %67 = tpu.matmul %64, %66, %cst_64 {dimension_numbers = #tpu.dot_dimension_numbers<[1], [0], [0], [1], [0, 0, 1, 1], [], []>} : vector<16x32xf32>, vector<32x32xf32>, vector<16x32xf32> -> vector<16x32xf32>
    %c1_65 = arith.constant 1 : index
    %c0_66 = arith.constant 0 : index
    %c0_67 = arith.constant 0 : index
    %68 = vector.load %arg9[%c1_65, %c0_66, %c0_67] : memref<4x32x32xf32, #tpu.memory_space<vmem>>, vector<1x32x32xf32>
    %69 = vector.shape_cast %68 : vector<1x32x32xf32> to vector<32x32xf32>
    %cst_68 = arith.constant dense<0.000000e+00> : vector<16x32xf32>
    %70 = tpu.matmul %64, %69, %cst_68 {dimension_numbers = #tpu.dot_dimension_numbers<[1], [0], [0], [1], [0, 0, 1, 1], [], []>} : vector<16x32xf32>, vector<32x32xf32>, vector<16x32xf32> -> vector<16x32xf32>
    %c1_69 = arith.constant 1 : index
    %c0_70 = arith.constant 0 : index
    %c0_71 = arith.constant 0 : index
    %71 = vector.load %arg10[%c1_69, %c0_70, %c0_71] : memref<4x4x32xf32, #tpu.memory_space<vmem>>, vector<1x4x32xf32>
    %72 = vector.shape_cast %71 : vector<1x4x32xf32> to vector<4x32xf32>
    %cst_72 = arith.constant dense<0.000000e+00> : vector<32x32xf32>
    %73 = tpu.matmul %3, %72, %cst_72 {dimension_numbers = #tpu.dot_dimension_numbers<[1], [0], [0], [1], [0, 0, 1, 1], [], []>} : vector<32x4xf32>, vector<4x32xf32>, vector<32x32xf32> -> vector<32x32xf32>
    %c1_73 = arith.constant 1 : index
    %c0_74 = arith.constant 0 : index
    %c0_75 = arith.constant 0 : index
    %74 = vector.load %arg11[%c1_73, %c0_74, %c0_75] : memref<4x1x32xf32, #tpu.memory_space<vmem>>, vector<1x1x32xf32>
    %75 = vector.shape_cast %74 : vector<1x1x32xf32> to vector<1x32xf32>
    %76 = vector.broadcast %75 : vector<1x32xf32> to vector<32x32xf32>
    %77 = arith.addf %73, %76 : vector<32x32xf32>
    %cst_76 = arith.constant dense<0.000000e+00> : vector<32x32xf32>
    %78 = tpu.matmul %7, %67, %cst_76 {dimension_numbers = #tpu.dot_dimension_numbers<[1], [0], [0], [1], [0, 0, 1, 1], [], []>} : vector<32x16xf32>, vector<16x32xf32>, vector<32x32xf32> -> vector<32x32xf32>
    %cst_77 = arith.constant dense<0.000000e+00> : vector<32x32xf32>
    %79 = tpu.matmul %5, %70, %cst_77 {dimension_numbers = #tpu.dot_dimension_numbers<[1], [0], [0], [1], [0, 0, 1, 1], [], []>} : vector<32x16xf32>, vector<16x32xf32>, vector<32x32xf32> -> vector<32x32xf32>
    %80 = arith.addf %78, %79 : vector<32x32xf32>
    %81 = arith.addf %80, %77 : vector<32x32xf32>
    %cst_78 = arith.constant 0.000000e+00 : f32
    %82 = vector.broadcast %cst_78 : f32 to vector<32x32xf32>
    %83 = arith.maximumf %81, %82 : vector<32x32xf32>
    %c1_79 = arith.constant 1 : index
    %c0_80 = arith.constant 0 : index
    %c0_81 = arith.constant 0 : index
    %84 = vector.load %arg12[%c1_79, %c0_80, %c0_81] : memref<4x32x32xf32, #tpu.memory_space<vmem>>, vector<1x32x32xf32>
    %85 = vector.shape_cast %84 : vector<1x32x32xf32> to vector<32x32xf32>
    %cst_82 = arith.constant dense<0.000000e+00> : vector<32x32xf32>
    %86 = tpu.matmul %83, %85, %cst_82 {dimension_numbers = #tpu.dot_dimension_numbers<[1], [0], [0], [1], [0, 0, 1, 1], [], []>} : vector<32x32xf32>, vector<32x32xf32>, vector<32x32xf32> -> vector<32x32xf32>
    %c1_83 = arith.constant 1 : index
    %c0_84 = arith.constant 0 : index
    %c0_85 = arith.constant 0 : index
    %87 = vector.load %arg13[%c1_83, %c0_84, %c0_85] : memref<4x1x32xf32, #tpu.memory_space<vmem>>, vector<1x1x32xf32>
    %88 = vector.shape_cast %87 : vector<1x1x32xf32> to vector<1x32xf32>
    %89 = vector.broadcast %88 : vector<1x32xf32> to vector<32x32xf32>
    %90 = arith.addf %86, %89 : vector<32x32xf32>
    %cst_86 = arith.constant 0.000000e+00 : f32
    %91 = vector.broadcast %cst_86 : f32 to vector<32x32xf32>
    %92 = arith.maximumf %90, %91 : vector<32x32xf32>
    %cst_87 = arith.constant dense<0.000000e+00> : vector<16x32xf32>
    %93 = tpu.matmul %7, %92, %cst_87 {dimension_numbers = #tpu.dot_dimension_numbers<[0], [0], [1], [1], [0, 1, 1, 1], [], []>} : vector<32x16xf32>, vector<32x32xf32>, vector<16x32xf32> -> vector<16x32xf32>
    %c1_88 = arith.constant 1 : index
    %c0_89 = arith.constant 0 : index
    %c0_90 = arith.constant 0 : index
    %94 = vector.load %arg14[%c1_88, %c0_89, %c0_90] : memref<4x32x32xf32, #tpu.memory_space<vmem>>, vector<1x32x32xf32>
    %95 = vector.shape_cast %94 : vector<1x32x32xf32> to vector<32x32xf32>
    %cst_91 = arith.constant dense<0.000000e+00> : vector<16x32xf32>
    %96 = tpu.matmul %64, %95, %cst_91 {dimension_numbers = #tpu.dot_dimension_numbers<[1], [0], [0], [1], [0, 0, 1, 1], [], []>} : vector<16x32xf32>, vector<32x32xf32>, vector<16x32xf32> -> vector<16x32xf32>
    %c1_92 = arith.constant 1 : index
    %c0_93 = arith.constant 0 : index
    %c0_94 = arith.constant 0 : index
    %97 = vector.load %arg15[%c1_92, %c0_93, %c0_94] : memref<4x32x32xf32, #tpu.memory_space<vmem>>, vector<1x32x32xf32>
    %98 = vector.shape_cast %97 : vector<1x32x32xf32> to vector<32x32xf32>
    %cst_95 = arith.constant dense<0.000000e+00> : vector<16x32xf32>
    %99 = tpu.matmul %93, %98, %cst_95 {dimension_numbers = #tpu.dot_dimension_numbers<[1], [0], [0], [1], [0, 0, 1, 1], [], []>} : vector<16x32xf32>, vector<32x32xf32>, vector<16x32xf32> -> vector<16x32xf32>
    %100 = arith.addf %96, %99 : vector<16x32xf32>
    %c1_96 = arith.constant 1 : index
    %c0_97 = arith.constant 0 : index
    %c0_98 = arith.constant 0 : index
    %101 = vector.load %arg16[%c1_96, %c0_97, %c0_98] : memref<4x1x32xf32, #tpu.memory_space<vmem>>, vector<1x1x32xf32>
    %102 = vector.shape_cast %101 : vector<1x1x32xf32> to vector<1x32xf32>
    %103 = vector.broadcast %102 : vector<1x32xf32> to vector<16x32xf32>
    %104 = arith.addf %100, %103 : vector<16x32xf32>
    %cst_99 = arith.constant 0.000000e+00 : f32
    %105 = vector.broadcast %cst_99 : f32 to vector<16x32xf32>
    %106 = arith.maximumf %104, %105 : vector<16x32xf32>
    %c1_100 = arith.constant 1 : index
    %c0_101 = arith.constant 0 : index
    %c0_102 = arith.constant 0 : index
    %107 = vector.load %arg17[%c1_100, %c0_101, %c0_102] : memref<4x32x32xf32, #tpu.memory_space<vmem>>, vector<1x32x32xf32>
    %108 = vector.shape_cast %107 : vector<1x32x32xf32> to vector<32x32xf32>
    %cst_103 = arith.constant dense<0.000000e+00> : vector<16x32xf32>
    %109 = tpu.matmul %106, %108, %cst_103 {dimension_numbers = #tpu.dot_dimension_numbers<[1], [0], [0], [1], [0, 0, 1, 1], [], []>} : vector<16x32xf32>, vector<32x32xf32>, vector<16x32xf32> -> vector<16x32xf32>
    %c1_104 = arith.constant 1 : index
    %c0_105 = arith.constant 0 : index
    %c0_106 = arith.constant 0 : index
    %110 = vector.load %arg18[%c1_104, %c0_105, %c0_106] : memref<4x1x32xf32, #tpu.memory_space<vmem>>, vector<1x1x32xf32>
    %111 = vector.shape_cast %110 : vector<1x1x32xf32> to vector<1x32xf32>
    %112 = vector.broadcast %111 : vector<1x32xf32> to vector<16x32xf32>
    %113 = arith.addf %109, %112 : vector<16x32xf32>
    %cst_107 = arith.constant 0.000000e+00 : f32
    %114 = vector.broadcast %cst_107 : f32 to vector<16x32xf32>
    %115 = arith.maximumf %113, %114 : vector<16x32xf32>
    %116 = arith.addf %64, %115 : vector<16x32xf32>
    %c2 = arith.constant 2 : index
    %c0_108 = arith.constant 0 : index
    %c0_109 = arith.constant 0 : index
    %117 = vector.load %arg8[%c2, %c0_108, %c0_109] : memref<4x32x32xf32, #tpu.memory_space<vmem>>, vector<1x32x32xf32>
    %118 = vector.shape_cast %117 : vector<1x32x32xf32> to vector<32x32xf32>
    %cst_110 = arith.constant dense<0.000000e+00> : vector<16x32xf32>
    %119 = tpu.matmul %116, %118, %cst_110 {dimension_numbers = #tpu.dot_dimension_numbers<[1], [0], [0], [1], [0, 0, 1, 1], [], []>} : vector<16x32xf32>, vector<32x32xf32>, vector<16x32xf32> -> vector<16x32xf32>
    %c2_111 = arith.constant 2 : index
    %c0_112 = arith.constant 0 : index
    %c0_113 = arith.constant 0 : index
    %120 = vector.load %arg9[%c2_111, %c0_112, %c0_113] : memref<4x32x32xf32, #tpu.memory_space<vmem>>, vector<1x32x32xf32>
    %121 = vector.shape_cast %120 : vector<1x32x32xf32> to vector<32x32xf32>
    %cst_114 = arith.constant dense<0.000000e+00> : vector<16x32xf32>
    %122 = tpu.matmul %116, %121, %cst_114 {dimension_numbers = #tpu.dot_dimension_numbers<[1], [0], [0], [1], [0, 0, 1, 1], [], []>} : vector<16x32xf32>, vector<32x32xf32>, vector<16x32xf32> -> vector<16x32xf32>
    %c2_115 = arith.constant 2 : index
    %c0_116 = arith.constant 0 : index
    %c0_117 = arith.constant 0 : index
    %123 = vector.load %arg10[%c2_115, %c0_116, %c0_117] : memref<4x4x32xf32, #tpu.memory_space<vmem>>, vector<1x4x32xf32>
    %124 = vector.shape_cast %123 : vector<1x4x32xf32> to vector<4x32xf32>
    %cst_118 = arith.constant dense<0.000000e+00> : vector<32x32xf32>
    %125 = tpu.matmul %3, %124, %cst_118 {dimension_numbers = #tpu.dot_dimension_numbers<[1], [0], [0], [1], [0, 0, 1, 1], [], []>} : vector<32x4xf32>, vector<4x32xf32>, vector<32x32xf32> -> vector<32x32xf32>
    %c2_119 = arith.constant 2 : index
    %c0_120 = arith.constant 0 : index
    %c0_121 = arith.constant 0 : index
    %126 = vector.load %arg11[%c2_119, %c0_120, %c0_121] : memref<4x1x32xf32, #tpu.memory_space<vmem>>, vector<1x1x32xf32>
    %127 = vector.shape_cast %126 : vector<1x1x32xf32> to vector<1x32xf32>
    %128 = vector.broadcast %127 : vector<1x32xf32> to vector<32x32xf32>
    %129 = arith.addf %125, %128 : vector<32x32xf32>
    %cst_122 = arith.constant dense<0.000000e+00> : vector<32x32xf32>
    %130 = tpu.matmul %7, %119, %cst_122 {dimension_numbers = #tpu.dot_dimension_numbers<[1], [0], [0], [1], [0, 0, 1, 1], [], []>} : vector<32x16xf32>, vector<16x32xf32>, vector<32x32xf32> -> vector<32x32xf32>
    %cst_123 = arith.constant dense<0.000000e+00> : vector<32x32xf32>
    %131 = tpu.matmul %5, %122, %cst_123 {dimension_numbers = #tpu.dot_dimension_numbers<[1], [0], [0], [1], [0, 0, 1, 1], [], []>} : vector<32x16xf32>, vector<16x32xf32>, vector<32x32xf32> -> vector<32x32xf32>
    %132 = arith.addf %130, %131 : vector<32x32xf32>
    %133 = arith.addf %132, %129 : vector<32x32xf32>
    %cst_124 = arith.constant 0.000000e+00 : f32
    %134 = vector.broadcast %cst_124 : f32 to vector<32x32xf32>
    %135 = arith.maximumf %133, %134 : vector<32x32xf32>
    %c2_125 = arith.constant 2 : index
    %c0_126 = arith.constant 0 : index
    %c0_127 = arith.constant 0 : index
    %136 = vector.load %arg12[%c2_125, %c0_126, %c0_127] : memref<4x32x32xf32, #tpu.memory_space<vmem>>, vector<1x32x32xf32>
    %137 = vector.shape_cast %136 : vector<1x32x32xf32> to vector<32x32xf32>
    %cst_128 = arith.constant dense<0.000000e+00> : vector<32x32xf32>
    %138 = tpu.matmul %135, %137, %cst_128 {dimension_numbers = #tpu.dot_dimension_numbers<[1], [0], [0], [1], [0, 0, 1, 1], [], []>} : vector<32x32xf32>, vector<32x32xf32>, vector<32x32xf32> -> vector<32x32xf32>
    %c2_129 = arith.constant 2 : index
    %c0_130 = arith.constant 0 : index
    %c0_131 = arith.constant 0 : index
    %139 = vector.load %arg13[%c2_129, %c0_130, %c0_131] : memref<4x1x32xf32, #tpu.memory_space<vmem>>, vector<1x1x32xf32>
    %140 = vector.shape_cast %139 : vector<1x1x32xf32> to vector<1x32xf32>
    %141 = vector.broadcast %140 : vector<1x32xf32> to vector<32x32xf32>
    %142 = arith.addf %138, %141 : vector<32x32xf32>
    %cst_132 = arith.constant 0.000000e+00 : f32
    %143 = vector.broadcast %cst_132 : f32 to vector<32x32xf32>
    %144 = arith.maximumf %142, %143 : vector<32x32xf32>
    %cst_133 = arith.constant dense<0.000000e+00> : vector<16x32xf32>
    %145 = tpu.matmul %7, %144, %cst_133 {dimension_numbers = #tpu.dot_dimension_numbers<[0], [0], [1], [1], [0, 1, 1, 1], [], []>} : vector<32x16xf32>, vector<32x32xf32>, vector<16x32xf32> -> vector<16x32xf32>
    %c2_134 = arith.constant 2 : index
    %c0_135 = arith.constant 0 : index
    %c0_136 = arith.constant 0 : index
    %146 = vector.load %arg14[%c2_134, %c0_135, %c0_136] : memref<4x32x32xf32, #tpu.memory_space<vmem>>, vector<1x32x32xf32>
    %147 = vector.shape_cast %146 : vector<1x32x32xf32> to vector<32x32xf32>
    %cst_137 = arith.constant dense<0.000000e+00> : vector<16x32xf32>
    %148 = tpu.matmul %116, %147, %cst_137 {dimension_numbers = #tpu.dot_dimension_numbers<[1], [0], [0], [1], [0, 0, 1, 1], [], []>} : vector<16x32xf32>, vector<32x32xf32>, vector<16x32xf32> -> vector<16x32xf32>
    %c2_138 = arith.constant 2 : index
    %c0_139 = arith.constant 0 : index
    %c0_140 = arith.constant 0 : index
    %149 = vector.load %arg15[%c2_138, %c0_139, %c0_140] : memref<4x32x32xf32, #tpu.memory_space<vmem>>, vector<1x32x32xf32>
    %150 = vector.shape_cast %149 : vector<1x32x32xf32> to vector<32x32xf32>
    %cst_141 = arith.constant dense<0.000000e+00> : vector<16x32xf32>
    %151 = tpu.matmul %145, %150, %cst_141 {dimension_numbers = #tpu.dot_dimension_numbers<[1], [0], [0], [1], [0, 0, 1, 1], [], []>} : vector<16x32xf32>, vector<32x32xf32>, vector<16x32xf32> -> vector<16x32xf32>
    %152 = arith.addf %148, %151 : vector<16x32xf32>
    %c2_142 = arith.constant 2 : index
    %c0_143 = arith.constant 0 : index
    %c0_144 = arith.constant 0 : index
    %153 = vector.load %arg16[%c2_142, %c0_143, %c0_144] : memref<4x1x32xf32, #tpu.memory_space<vmem>>, vector<1x1x32xf32>
    %154 = vector.shape_cast %153 : vector<1x1x32xf32> to vector<1x32xf32>
    %155 = vector.broadcast %154 : vector<1x32xf32> to vector<16x32xf32>
    %156 = arith.addf %152, %155 : vector<16x32xf32>
    %cst_145 = arith.constant 0.000000e+00 : f32
    %157 = vector.broadcast %cst_145 : f32 to vector<16x32xf32>
    %158 = arith.maximumf %156, %157 : vector<16x32xf32>
    %c2_146 = arith.constant 2 : index
    %c0_147 = arith.constant 0 : index
    %c0_148 = arith.constant 0 : index
    %159 = vector.load %arg17[%c2_146, %c0_147, %c0_148] : memref<4x32x32xf32, #tpu.memory_space<vmem>>, vector<1x32x32xf32>
    %160 = vector.shape_cast %159 : vector<1x32x32xf32> to vector<32x32xf32>
    %cst_149 = arith.constant dense<0.000000e+00> : vector<16x32xf32>
    %161 = tpu.matmul %158, %160, %cst_149 {dimension_numbers = #tpu.dot_dimension_numbers<[1], [0], [0], [1], [0, 0, 1, 1], [], []>} : vector<16x32xf32>, vector<32x32xf32>, vector<16x32xf32> -> vector<16x32xf32>
    %c2_150 = arith.constant 2 : index
    %c0_151 = arith.constant 0 : index
    %c0_152 = arith.constant 0 : index
    %162 = vector.load %arg18[%c2_150, %c0_151, %c0_152] : memref<4x1x32xf32, #tpu.memory_space<vmem>>, vector<1x1x32xf32>
    %163 = vector.shape_cast %162 : vector<1x1x32xf32> to vector<1x32xf32>
    %164 = vector.broadcast %163 : vector<1x32xf32> to vector<16x32xf32>
    %165 = arith.addf %161, %164 : vector<16x32xf32>
    %cst_153 = arith.constant 0.000000e+00 : f32
    %166 = vector.broadcast %cst_153 : f32 to vector<16x32xf32>
    %167 = arith.maximumf %165, %166 : vector<16x32xf32>
    %168 = arith.addf %116, %167 : vector<16x32xf32>
    %c3 = arith.constant 3 : index
    %c0_154 = arith.constant 0 : index
    %c0_155 = arith.constant 0 : index
    %169 = vector.load %arg8[%c3, %c0_154, %c0_155] : memref<4x32x32xf32, #tpu.memory_space<vmem>>, vector<1x32x32xf32>
    %170 = vector.shape_cast %169 : vector<1x32x32xf32> to vector<32x32xf32>
    %cst_156 = arith.constant dense<0.000000e+00> : vector<16x32xf32>
    %171 = tpu.matmul %168, %170, %cst_156 {dimension_numbers = #tpu.dot_dimension_numbers<[1], [0], [0], [1], [0, 0, 1, 1], [], []>} : vector<16x32xf32>, vector<32x32xf32>, vector<16x32xf32> -> vector<16x32xf32>
    %c3_157 = arith.constant 3 : index
    %c0_158 = arith.constant 0 : index
    %c0_159 = arith.constant 0 : index
    %172 = vector.load %arg9[%c3_157, %c0_158, %c0_159] : memref<4x32x32xf32, #tpu.memory_space<vmem>>, vector<1x32x32xf32>
    %173 = vector.shape_cast %172 : vector<1x32x32xf32> to vector<32x32xf32>
    %cst_160 = arith.constant dense<0.000000e+00> : vector<16x32xf32>
    %174 = tpu.matmul %168, %173, %cst_160 {dimension_numbers = #tpu.dot_dimension_numbers<[1], [0], [0], [1], [0, 0, 1, 1], [], []>} : vector<16x32xf32>, vector<32x32xf32>, vector<16x32xf32> -> vector<16x32xf32>
    %c3_161 = arith.constant 3 : index
    %c0_162 = arith.constant 0 : index
    %c0_163 = arith.constant 0 : index
    %175 = vector.load %arg10[%c3_161, %c0_162, %c0_163] : memref<4x4x32xf32, #tpu.memory_space<vmem>>, vector<1x4x32xf32>
    %176 = vector.shape_cast %175 : vector<1x4x32xf32> to vector<4x32xf32>
    %cst_164 = arith.constant dense<0.000000e+00> : vector<32x32xf32>
    %177 = tpu.matmul %3, %176, %cst_164 {dimension_numbers = #tpu.dot_dimension_numbers<[1], [0], [0], [1], [0, 0, 1, 1], [], []>} : vector<32x4xf32>, vector<4x32xf32>, vector<32x32xf32> -> vector<32x32xf32>
    %c3_165 = arith.constant 3 : index
    %c0_166 = arith.constant 0 : index
    %c0_167 = arith.constant 0 : index
    %178 = vector.load %arg11[%c3_165, %c0_166, %c0_167] : memref<4x1x32xf32, #tpu.memory_space<vmem>>, vector<1x1x32xf32>
    %179 = vector.shape_cast %178 : vector<1x1x32xf32> to vector<1x32xf32>
    %180 = vector.broadcast %179 : vector<1x32xf32> to vector<32x32xf32>
    %181 = arith.addf %177, %180 : vector<32x32xf32>
    %cst_168 = arith.constant dense<0.000000e+00> : vector<32x32xf32>
    %182 = tpu.matmul %7, %171, %cst_168 {dimension_numbers = #tpu.dot_dimension_numbers<[1], [0], [0], [1], [0, 0, 1, 1], [], []>} : vector<32x16xf32>, vector<16x32xf32>, vector<32x32xf32> -> vector<32x32xf32>
    %cst_169 = arith.constant dense<0.000000e+00> : vector<32x32xf32>
    %183 = tpu.matmul %5, %174, %cst_169 {dimension_numbers = #tpu.dot_dimension_numbers<[1], [0], [0], [1], [0, 0, 1, 1], [], []>} : vector<32x16xf32>, vector<16x32xf32>, vector<32x32xf32> -> vector<32x32xf32>
    %184 = arith.addf %182, %183 : vector<32x32xf32>
    %185 = arith.addf %184, %181 : vector<32x32xf32>
    %cst_170 = arith.constant 0.000000e+00 : f32
    %186 = vector.broadcast %cst_170 : f32 to vector<32x32xf32>
    %187 = arith.maximumf %185, %186 : vector<32x32xf32>
    %c3_171 = arith.constant 3 : index
    %c0_172 = arith.constant 0 : index
    %c0_173 = arith.constant 0 : index
    %188 = vector.load %arg12[%c3_171, %c0_172, %c0_173] : memref<4x32x32xf32, #tpu.memory_space<vmem>>, vector<1x32x32xf32>
    %189 = vector.shape_cast %188 : vector<1x32x32xf32> to vector<32x32xf32>
    %cst_174 = arith.constant dense<0.000000e+00> : vector<32x32xf32>
    %190 = tpu.matmul %187, %189, %cst_174 {dimension_numbers = #tpu.dot_dimension_numbers<[1], [0], [0], [1], [0, 0, 1, 1], [], []>} : vector<32x32xf32>, vector<32x32xf32>, vector<32x32xf32> -> vector<32x32xf32>
    %c3_175 = arith.constant 3 : index
    %c0_176 = arith.constant 0 : index
    %c0_177 = arith.constant 0 : index
    %191 = vector.load %arg13[%c3_175, %c0_176, %c0_177] : memref<4x1x32xf32, #tpu.memory_space<vmem>>, vector<1x1x32xf32>
    %192 = vector.shape_cast %191 : vector<1x1x32xf32> to vector<1x32xf32>
    %193 = vector.broadcast %192 : vector<1x32xf32> to vector<32x32xf32>
    %194 = arith.addf %190, %193 : vector<32x32xf32>
    %cst_178 = arith.constant 0.000000e+00 : f32
    %195 = vector.broadcast %cst_178 : f32 to vector<32x32xf32>
    %196 = arith.maximumf %194, %195 : vector<32x32xf32>
    %cst_179 = arith.constant dense<0.000000e+00> : vector<16x32xf32>
    %197 = tpu.matmul %7, %196, %cst_179 {dimension_numbers = #tpu.dot_dimension_numbers<[0], [0], [1], [1], [0, 1, 1, 1], [], []>} : vector<32x16xf32>, vector<32x32xf32>, vector<16x32xf32> -> vector<16x32xf32>
    %c3_180 = arith.constant 3 : index
    %c0_181 = arith.constant 0 : index
    %c0_182 = arith.constant 0 : index
    %198 = vector.load %arg14[%c3_180, %c0_181, %c0_182] : memref<4x32x32xf32, #tpu.memory_space<vmem>>, vector<1x32x32xf32>
    %199 = vector.shape_cast %198 : vector<1x32x32xf32> to vector<32x32xf32>
    %cst_183 = arith.constant dense<0.000000e+00> : vector<16x32xf32>
    %200 = tpu.matmul %168, %199, %cst_183 {dimension_numbers = #tpu.dot_dimension_numbers<[1], [0], [0], [1], [0, 0, 1, 1], [], []>} : vector<16x32xf32>, vector<32x32xf32>, vector<16x32xf32> -> vector<16x32xf32>
    %c3_184 = arith.constant 3 : index
    %c0_185 = arith.constant 0 : index
    %c0_186 = arith.constant 0 : index
    %201 = vector.load %arg15[%c3_184, %c0_185, %c0_186] : memref<4x32x32xf32, #tpu.memory_space<vmem>>, vector<1x32x32xf32>
    %202 = vector.shape_cast %201 : vector<1x32x32xf32> to vector<32x32xf32>
    %cst_187 = arith.constant dense<0.000000e+00> : vector<16x32xf32>
    %203 = tpu.matmul %197, %202, %cst_187 {dimension_numbers = #tpu.dot_dimension_numbers<[1], [0], [0], [1], [0, 0, 1, 1], [], []>} : vector<16x32xf32>, vector<32x32xf32>, vector<16x32xf32> -> vector<16x32xf32>
    %204 = arith.addf %200, %203 : vector<16x32xf32>
    %c3_188 = arith.constant 3 : index
    %c0_189 = arith.constant 0 : index
    %c0_190 = arith.constant 0 : index
    %205 = vector.load %arg16[%c3_188, %c0_189, %c0_190] : memref<4x1x32xf32, #tpu.memory_space<vmem>>, vector<1x1x32xf32>
    %206 = vector.shape_cast %205 : vector<1x1x32xf32> to vector<1x32xf32>
    %207 = vector.broadcast %206 : vector<1x32xf32> to vector<16x32xf32>
    %208 = arith.addf %204, %207 : vector<16x32xf32>
    %cst_191 = arith.constant 0.000000e+00 : f32
    %209 = vector.broadcast %cst_191 : f32 to vector<16x32xf32>
    %210 = arith.maximumf %208, %209 : vector<16x32xf32>
    %c3_192 = arith.constant 3 : index
    %c0_193 = arith.constant 0 : index
    %c0_194 = arith.constant 0 : index
    %211 = vector.load %arg17[%c3_192, %c0_193, %c0_194] : memref<4x32x32xf32, #tpu.memory_space<vmem>>, vector<1x32x32xf32>
    %212 = vector.shape_cast %211 : vector<1x32x32xf32> to vector<32x32xf32>
    %cst_195 = arith.constant dense<0.000000e+00> : vector<16x32xf32>
    %213 = tpu.matmul %210, %212, %cst_195 {dimension_numbers = #tpu.dot_dimension_numbers<[1], [0], [0], [1], [0, 0, 1, 1], [], []>} : vector<16x32xf32>, vector<32x32xf32>, vector<16x32xf32> -> vector<16x32xf32>
    %c3_196 = arith.constant 3 : index
    %c0_197 = arith.constant 0 : index
    %c0_198 = arith.constant 0 : index
    %214 = vector.load %arg18[%c3_196, %c0_197, %c0_198] : memref<4x1x32xf32, #tpu.memory_space<vmem>>, vector<1x1x32xf32>
    %215 = vector.shape_cast %214 : vector<1x1x32xf32> to vector<1x32xf32>
    %216 = vector.broadcast %215 : vector<1x32xf32> to vector<16x32xf32>
    %217 = arith.addf %213, %216 : vector<16x32xf32>
    %cst_199 = arith.constant 0.000000e+00 : f32
    %218 = vector.broadcast %cst_199 : f32 to vector<16x32xf32>
    %219 = arith.maximumf %217, %218 : vector<16x32xf32>
    %220 = arith.addf %168, %219 : vector<16x32xf32>
    %c0_200 = arith.constant 0 : index
    %c0_201 = arith.constant 0 : index
    %c0_202 = arith.constant 0 : index
    %221 = vector.load %arg5[%c0_200, %c0_201, %c0_202] : memref<1x2x16xf32, #tpu.memory_space<vmem>>, vector<1x2x16xf32>
    %222 = vector.shape_cast %221 : vector<1x2x16xf32> to vector<2x16xf32>
    %cst_203 = arith.constant dense<0.000000e+00> : vector<2x32xf32>
    %223 = tpu.matmul %222, %220, %cst_203 {dimension_numbers = #tpu.dot_dimension_numbers<[1], [0], [0], [1], [0, 0, 1, 1], [], []>} : vector<2x16xf32>, vector<16x32xf32>, vector<2x32xf32> -> vector<2x32xf32>
    %c0_204 = arith.constant 0 : index
    %c0_205 = arith.constant 0 : index
    %224 = vector.load %arg19[%c0_204, %c0_205] : memref<1x32xf32, #tpu.memory_space<vmem>>, vector<1x32xf32>
    %cst_206 = arith.constant dense<0.000000e+00> : vector<1x2xf32>
    %225 = tpu.matmul %224, %223, %cst_206 {dimension_numbers = #tpu.dot_dimension_numbers<[1], [1], [0], [0], [0, 0, 1, 0], [], []>} : vector<1x32xf32>, vector<2x32xf32>, vector<1x2xf32> -> vector<1x2xf32>
    %c0_207 = arith.constant 0 : index
    %c0_208 = arith.constant 0 : index
    %226 = vector.load %arg20[%c0_207, %c0_208] : memref<1x1xf32, #tpu.memory_space<vmem>>, vector<1x1xf32>
    %227 = vector.broadcast %226 : vector<1x1xf32> to vector<1x2xf32>
    %228 = arith.addf %225, %227 : vector<1x2xf32>
    %c0_209 = arith.constant 0 : index
    %c0_210 = arith.constant 0 : index
    %c0_211 = arith.constant 0 : index
    %229 = vector.load %arg21[%c0_209, %c0_210, %c0_211] : memref<1x1x2xf32, #tpu.memory_space<vmem>>, vector<1x1x2xf32>
    %230 = vector.shape_cast %229 : vector<1x1x2xf32> to vector<1x2xf32>
    %231 = vector.shape_cast %228 : vector<1x2xf32> to vector<1x1x2xf32>
    tpu.vector_store %arg21[%c0_209, %c0_210, %c0_211], %231 {strides = array<i32>} : memref<1x1x2xf32, #tpu.memory_space<vmem>>, vector<1x1x2xf32>,
    return
  }
  func.func @transform_0(%arg0: i32) -> (i32, i32, i32) {
    %c0_i32 = arith.constant 0 : i32
    %c0_i32_0 = arith.constant 0 : i32
    %c0_i32_1 = arith.constant 0 : i32
    return %arg0, %c0_i32, %c0_i32_0 : i32, i32, i32
  }
  func.func @transform_1(%arg0: i32) -> (i32, i32, i32) {
    %c0_i32 = arith.constant 0 : i32
    %c0_i32_0 = arith.constant 0 : i32
    %c0_i32_1 = arith.constant 0 : i32
    return %arg0, %c0_i32, %c0_i32_0 : i32, i32, i32
  }
  func.func @transform_2(%arg0: i32) -> (i32, i32, i32) {
    %c0_i32 = arith.constant 0 : i32
    %c0_i32_0 = arith.constant 0 : i32
    %c0_i32_1 = arith.constant 0 : i32
    return %arg0, %c0_i32, %c0_i32_0 : i32, i32, i32
  }
  func.func @transform_3(%arg0: i32) -> (i32, i32, i32) {
    %c0_i32 = arith.constant 0 : i32
    %c0_i32_0 = arith.constant 0 : i32
    %c0_i32_1 = arith.constant 0 : i32
    return %arg0, %c0_i32, %c0_i32_0 : i32, i32, i32
  }
  func.func @transform_4(%arg0: i32) -> (i32, i32, i32) {
    %c0_i32 = arith.constant 0 : i32
    %c0_i32_0 = arith.constant 0 : i32
    %c0_i32_1 = arith.constant 0 : i32
    return %arg0, %c0_i32, %c0_i32_0 : i32, i32, i32
  }
  func.func @transform_5(%arg0: i32) -> (i32, i32) {
    %c0_i32 = arith.constant 0 : i32
    %c0_i32_0 = arith.constant 0 : i32
    %c0_i32_1 = arith.constant 0 : i32
    return %c0_i32, %c0_i32_0 : i32, i32
  }
  func.func @transform_6(%arg0: i32) -> (i32, i32) {
    %c0_i32 = arith.constant 0 : i32
    %c0_i32_0 = arith.constant 0 : i32
    %c0_i32_1 = arith.constant 0 : i32
    return %c0_i32, %c0_i32_0 : i32, i32
  }
  func.func @transform_7(%arg0: i32) -> (i32, i32, i32) {
    %c0_i32 = arith.constant 0 : i32
    %c0_i32_0 = arith.constant 0 : i32
    %c0_i32_1 = arith.constant 0 : i32
    %c0_i32_2 = arith.constant 0 : i32
    return %c0_i32, %c0_i32_0, %c0_i32_1 : i32, i32, i32
  }
  func.func @transform_8(%arg0: i32) -> (i32, i32, i32) {
    %c0_i32 = arith.constant 0 : i32
    %c0_i32_0 = arith.constant 0 : i32
    %c0_i32_1 = arith.constant 0 : i32
    %c0_i32_2 = arith.constant 0 : i32
    return %c0_i32, %c0_i32_0, %c0_i32_1 : i32, i32, i32
  }
  func.func @transform_9(%arg0: i32) -> (i32, i32, i32) {
    %c0_i32 = arith.constant 0 : i32
    %c0_i32_0 = arith.constant 0 : i32
    %c0_i32_1 = arith.constant 0 : i32
    %c0_i32_2 = arith.constant 0 : i32
    return %c0_i32, %c0_i32_0, %c0_i32_1 : i32, i32, i32
  }
  func.func @transform_10(%arg0: i32) -> (i32, i32, i32) {
    %c0_i32 = arith.constant 0 : i32
    %c0_i32_0 = arith.constant 0 : i32
    %c0_i32_1 = arith.constant 0 : i32
    %c0_i32_2 = arith.constant 0 : i32
    return %c0_i32, %c0_i32_0, %c0_i32_1 : i32, i32, i32
  }
  func.func @transform_11(%arg0: i32) -> (i32, i32, i32) {
    %c0_i32 = arith.constant 0 : i32
    %c0_i32_0 = arith.constant 0 : i32
    %c0_i32_1 = arith.constant 0 : i32
    %c0_i32_2 = arith.constant 0 : i32
    return %c0_i32, %c0_i32_0, %c0_i32_1 : i32, i32, i32
  }
  func.func @transform_12(%arg0: i32) -> (i32, i32, i32) {
    %c0_i32 = arith.constant 0 : i32
    %c0_i32_0 = arith.constant 0 : i32
    %c0_i32_1 = arith.constant 0 : i32
    %c0_i32_2 = arith.constant 0 : i32
    return %c0_i32, %c0_i32_0, %c0_i32_1 : i32, i32, i32
  }
  func.func @transform_13(%arg0: i32) -> (i32, i32, i32) {
    %c0_i32 = arith.constant 0 : i32
    %c0_i32_0 = arith.constant 0 : i32
    %c0_i32_1 = arith.constant 0 : i32
    %c0_i32_2 = arith.constant 0 : i32
    return %c0_i32, %c0_i32_0, %c0_i32_1 : i32, i32, i32
  }
  func.func @transform_14(%arg0: i32) -> (i32, i32, i32) {
    %c0_i32 = arith.constant 0 : i32
    %c0_i32_0 = arith.constant 0 : i32
    %c0_i32_1 = arith.constant 0 : i32
    %c0_i32_2 = arith.constant 0 : i32
    return %c0_i32, %c0_i32_0, %c0_i32_1 : i32, i32, i32
  }
  func.func @transform_15(%arg0: i32) -> (i32, i32, i32) {
    %c0_i32 = arith.constant 0 : i32
    %c0_i32_0 = arith.constant 0 : i32
    %c0_i32_1 = arith.constant 0 : i32
    %c0_i32_2 = arith.constant 0 : i32
    return %c0_i32, %c0_i32_0, %c0_i32_1 : i32, i32, i32
  }
  func.func @transform_16(%arg0: i32) -> (i32, i32, i32) {
    %c0_i32 = arith.constant 0 : i32
    %c0_i32_0 = arith.constant 0 : i32
    %c0_i32_1 = arith.constant 0 : i32
    %c0_i32_2 = arith.constant 0 : i32
    return %c0_i32, %c0_i32_0, %c0_i32_1 : i32, i32, i32
  }
  func.func @transform_17(%arg0: i32) -> (i32, i32, i32) {
    %c0_i32 = arith.constant 0 : i32
    %c0_i32_0 = arith.constant 0 : i32
    %c0_i32_1 = arith.constant 0 : i32
    %c0_i32_2 = arith.constant 0 : i32
    return %c0_i32, %c0_i32_0, %c0_i32_1 : i32, i32, i32
  }
  func.func @transform_18(%arg0: i32) -> (i32, i32) {
    %c0_i32 = arith.constant 0 : i32
    %c0_i32_0 = arith.constant 0 : i32
    %c0_i32_1 = arith.constant 0 : i32
    return %c0_i32, %c0_i32_0 : i32, i32
  }
  func.func @transform_19(%arg0: i32) -> (i32, i32) {
    %c0_i32 = arith.constant 0 : i32
    %c0_i32_0 = arith.constant 0 : i32
    %c0_i32_1 = arith.constant 0 : i32
    return %c0_i32, %c0_i32_0 : i32, i32
  }
  func.func @transform_20(%arg0: i32) -> (i32, i32, i32) {
    %c0_i32 = arith.constant 0 : i32
    %c0_i32_0 = arith.constant 0 : i32
    %c0_i32_1 = arith.constant 0 : i32
    return %arg0, %c0_i32, %c0_i32_0 : i32, i32, i32
  }
}

</mosaic_0001>

<bundles_post_ra>
// kernel: tpu_custom_call.1
= control target key start
LH: loop header
LB: loop body
LE: loop exit
PB: predicated region body
PF: predicated region fallthrough
CT: control target
= control target key end

     0   :  { %s7145_s0 = inlined_call_operand.vmem [shape: f32[2,16,11], index: 0, kind: input, shape index: {}]   ;;  %s7146_s1 = inlined_call_operand.vmem [shape: f32[2,32,4], index: 1, kind: input, shape index: {}]   ;;  %s7147_s2 = inlined_call_operand.vmem [shape: f32[2,32,16], index: 2, kind: input, shape index: {}]   ;;  %s7148_s3 = inlined_call_operand.vmem [shape: f32[2,32,16], index: 3, kind: input, shape index: {}]   ;;  %s7149_s4 = inlined_call_operand.hbm [shape: f32[2,2,16], index: 4, kind: input, shape index: {}]   ;;  %s7150_s5 = inlined_call_operand.hbm [shape: f32[11,32], index: 5, kind: input, shape index: {}]   ;;  %s7151_s6 = inlined_call_operand.hbm [shape: f32[1,32], index: 6, kind: input, shape index: {}]   ;;  %s7152_s7 = inlined_call_operand.vmem [shape: f32[4,32,32], index: 7, kind: input, shape index: {}]   ;;  %s7153_s8 = inlined_call_operand.vmem [shape: f32[4,32,32], index: 8, kind: input, shape index: {}]   ;;  %s7154_s9 = inlined_call_operand.vmem [shape: f32[4,4,32], index: 9, kind: input, shape index: {}]   ;;  %s7155_s10 = inlined_call_operand.hbm [shape: f32[4,1,32], index: 10, kind: input, shape index: {}]   ;;  %s7156_s11 = inlined_call_operand.hbm [shape: f32[4,32,32], index: 11, kind: input, shape index: {}]   ;;  %s7157_s12 = inlined_call_operand.vmem [shape: f32[4,1,32], index: 12, kind: input, shape index: {}]   ;;  %s7158_s13 = inlined_call_operand.hbm [shape: f32[4,32,32], index: 13, kind: input, shape index: {}]   ;;  %s7159_s14 = inlined_call_operand.hbm [shape: f32[4,32,32], index: 14, kind: input, shape index: {}]   ;;  %s7160_s15 = inlined_call_operand.vmem [shape: f32[4,1,32], index: 15, kind: input, shape index: {}]   ;;  %s7161_s16 = inlined_call_operand.hbm [shape: f32[4,32,32], index: 16, kind: input, shape index: {}]   ;;  %s7162_s17 = inlined_call_operand.vmem [shape: f32[4,1,32], index: 17, kind: input, shape index: {}]   ;;  %s7163_s18 = inlined_call_operand.vmem [shape: f32[1,32], index: 18, kind: input, shape index: {}]   ;;  %s7164_s19 = inlined_call_operand.<no memory space> [shape: f32[1,1], index: 19, kind: input, shape index: {}]   ;;  %s7165_s20 = inlined_call_operand.hbm [shape: f32[2,1,2], index: 20, kind: output, shape index: {}]  }
   0x1   :  { %7172 = sst [smem:[#allocation25_spill]] %s7145_s0  ;;  %v25_v0 = vstv %s7164_s19 }
   0x2   :  { %7173 = sst [smem:[#allocation26_spill]] %s7146_s1  ;;  %26 = vst [vmem:[#allocation2] sm:$0x1] %v25_v0 }
   0x3   :  { %7174 = sst [smem:[#allocation27_spill]] %s7147_s2 }
   0x4   :  { %7175 = sst [smem:[#allocation28_spill]] %s7148_s3 }
   0x5   :  { %7176 = sst [smem:[#allocation29_spill]] %s7149_s4 }
   0x6   :  { %7177 = sst [smem:[#allocation30_spill]] %s7150_s5 }
   0x7   :  { %7178 = sst [smem:[#allocation31_spill]] %s7151_s6 }
   0x8   :  { %7179 = sst [smem:[#allocation32_spill]] %s7155_s10 }
   0x9   :  { %7180 = sst [smem:[#allocation33_spill]] %s7156_s11 }
   0xa   :  { %7181 = sst [smem:[#allocation34_spill]] %s7158_s13 }
   0xb   :  { %7182 = sst [smem:[#allocation35_spill]] %s7159_s14 }
   0xc   :  { %7183 = sst [smem:[#allocation36_spill]] %s7161_s16 }
   0xd   :  { %7184 = sst [smem:[#allocation37_spill]] %s7163_s18 }
   0xe   :  { %7185 = sst [smem:[#allocation38_spill]] %s7165_s20 }
   0xf   :  { %27 = vsyncpa [#allocation4], 0 }
  0x10   :  { %29 = vsyncpa [#allocation4 + $0x1], 0 }
  0x11   :  { %30 = vsyncpa [#allocation7], 0 }
  0x12   :  { %31 = vsyncpa [#allocation10], 0 }
  0x13   :  { %32 = vsyncpa [#allocation13], 0 }
  0x14   :  { %33 = vsyncpa [#allocation16], 0 }
  0x15   :  { %34 = vsyncpa [#allocation5], 0 }
  0x16   :  { %36 = vsyncpa [#allocation5 + $0x1], 0  ;;  %s6456_s23 = smov 0   ;;  %s6458_s24 = smov 0  }
  0x17   :  { %s6460_s2 = smov 0   ;;  %s6462_s25 = smov 0  }
  0x18 LB: > { %s6332_s19 = smov [#allocation6]   ;;  %s6477_s26 = sadd.s32 4294967295, %s6330_s25   ;;  %s6330_s25 = sphi %s6462_s25, %s7226_s25   ;;  %s6326_s2 = sphi %s6460_s2, %s7225_s2   ;;  %s6322_s24 = sphi %s6458_s24, %s7224_s24   ;;  %s6318_s23 = sphi %s6456_s23, %s7223_s23  }
  0x19   : > { %s530_s3 = sshll.u32 %s6332_s19, 4  ;;  %p4988_p0 = scmp.ge.s32.totalorder %s6330_s25, 1  ;;  %s531_s3 = int_to_ptr.vmem [resolvable:$true] %s530_s3 }
  0x1a   : > { %p7168_p1 = scmp.eq.s32.totalorder %s6477_s26, 0  ;;  %p518_p2 = scmp.lt.s32.totalorder %s6330_s25, 3 }
  0x1b   : > { %s6333_s28 = smov [#allocation9]   ;;  %s6334_s30 = smov [#allocation12]  }
  0x1c   : > { %p6482_p3 = pnand %p4988_p0, %p518_p2  ;;  %s563_s4 = sshll.u32 %s6333_s28, 4  ;;  %s6495_s4 = int_to_ptr.vmem [resolvable:$true] %s563_s4 }
  0x1d   : > { %s6497_s0 = sshll.u32 %s6334_s30, 4  ;;  %s6051_s1 = scalar_lea.vmem %s531_s3, 256  ;;  %s593_s0 = int_to_ptr.vmem [resolvable:$true] %s6497_s0 }
  0x1e   : > { %s7186_s27 = scalar_select %p6482_p3, 1, 0 }
  0x1f   : > { %p5934_p5 = pneg %p6482_p3  ;;  %p6052_p8 = scmp.ne.s32.totalorder %s531_s3, %s6051_s1 }
  0x20   : > { %p6059_p11 = scmp.lt.s32.totalorder %s531_s3, %s531_s3  ;;  %p6060_p12 = scmp.lt.s32.totalorder %s6051_s1, %s6051_s1 }
  0x21   : > { %p6491_p6 = pnand %p5934_p5, %p7168_p1 }
  0x22   : > { %p6061_p13 = por %p6060_p12, %p6059_p11 }
  0x23   : > { %p6501_p7 = pneg %p6491_p6 }
  0x25   : > { %p6054_p9 = pnand %p6052_p8, %p6501_p7 }
  0x27   : > { %p6055_p10 = pneg %p6054_p9 }
  0x29   : > { %p6062_p0 = pnand %p6061_p13, %p6055_p10 }
  0x2b   : > { %6065 = shalt.err (!%p6062_p0)
}
  0x2c   : > { %s6335_s22 = smov 128   ;;  %s6336_s19 = smov 8  }
  0x2d   : > { %s7189_s5 = sld [smem:[#allocation30_spill]]  ;;  %s6077_s20 = scalar_lea.vmem %s6495_s4, 64 }
  0x2e   : > { %p6078_p2 = scmp.ne.s32.totalorder %s6495_s4, %s6077_s20  ;;  %p6085_p9 = scmp.lt.s32.totalorder %s6495_s4, %s6495_s4 }
  0x2f   : > { %p6086_p10 = scmp.lt.s32.totalorder %s6077_s20, %s6077_s20 }
  0x30   : > { %p6080_p5 = pnand %p6078_p2, %p6501_p7 }
  0x31   : > { %p6087_p11 = por %p6086_p10, %p6085_p9 }
  0x32   : > { %p6081_p8 = pneg %p6080_p5 }
  0x33   : > { %5937 = dma.hbm_to_vmem [thread:$0]  (!%p6491_p6), %s7189_s5, 256, %s531_s3, [#allocation7], %s6335_s22, %s6335_s22, %s6336_s19  }
  0x34   : > { %p6088_p12 = pnand %p6087_p11, %p6081_p8 }
  0x36   : > { %6091 = shalt.err (!%p6088_p12)
}
  0x37   : > { %s6337_s1 = smov 16   ;;  %s6338_s18 = smov 1  }
  0x38   : > { %s7190_s10 = sld [smem:[#allocation32_spill]]  ;;  %s6103_s30 = scalar_lea.vmem %s593_s0, 2048 }
  0x39   : > { %p6104_p13 = scmp.ne.s32.totalorder %s593_s0, %s6103_s30  ;;  %p6111_p5 = scmp.lt.s32.totalorder %s593_s0, %s593_s0 }
  0x3a   : > { %p6112_p8 = scmp.lt.s32.totalorder %s6103_s30, %s6103_s30 }
  0x3b   : > { %p6106_p0 = pnand %p6104_p13, %p6501_p7 }
  0x3c   : > { %p6113_p9 = por %p6112_p8, %p6111_p5 }
  0x3d   : > { %p6107_p2 = pneg %p6106_p0 }
  0x3e   : > { %5943 = dma.hbm_to_vmem [thread:$0]  (!%p6491_p6), %s7190_s10, 64, %s6495_s4, [#allocation10], %s6337_s1, %s6337_s1, %s6338_s18  }
  0x3f   : > { %p6114_p10 = pnand %p6113_p9, %p6107_p2 }
  0x41   : > { %6117 = shalt.err (!%p6114_p10)
}
  0x42   : > { %s7191_s13 = sld [smem:[#allocation34_spill]]  ;;  %s6339_s18 = smov [#allocation8]  }
  0x43   : > { %s544_s4 = sshll.u32 %s6339_s18, 4  ;;  %s6340_s1 = smov [#allocation11]   ;;  %s545_s4 = int_to_ptr.vmem [resolvable:$true] %s544_s4 }
  0x44   : > { %s576_s28 = sshll.u32 %s6340_s1, 4  ;;  %s6129_s3 = scalar_lea.vmem %s545_s4, 16  ;;  %s577_s28 = int_to_ptr.vmem [resolvable:$true] %s576_s28 }
  0x45   : > { %p6130_p11 = scmp.ne.s32.totalorder %s545_s4, %s6129_s3  ;;  %s6136_s30 = scalar_lea.vmem %s545_s4, 32 }
  0x46   : > { %p6137_p0 = scmp.lt.s32.totalorder %s545_s4, %s545_s4  ;;  %p6138_p2 = scmp.lt.s32.totalorder %s6136_s30, %s6129_s3 }
  0x47   : > { %p6132_p12 = pnand %p6130_p11, %p6501_p7 }
  0x48   : > { %5949 = dma.hbm_to_vmem [thread:$0]  (!%p6491_p6), %s7191_s13, 2048, %s593_s0, [#allocation13], %s6335_s22, %s6335_s22, %s6336_s19  }
  0x49   : > { %p6133_p13 = pneg %p6132_p12  ;;  %p6139_p5 = por %p6138_p2, %p6137_p0 }
  0x4b   : > { %p6140_p8 = pnand %p6139_p5, %p6133_p13 }
  0x4d   : > { %6143 = shalt.err (!%p6140_p8)
}
  0x4e   : > { %s7192_s6 = sld [smem:[#allocation31_spill]]  ;;  %s6155_s20 = scalar_lea.vmem %s577_s28, 2048 }
  0x4f   : > { %p6156_p9 = scmp.ne.s32.totalorder %s577_s28, %s6155_s20  ;;  %p6163_p12 = scmp.lt.s32.totalorder %s577_s28, %s577_s28 }
  0x50   : > { %p6164_p4 = scmp.lt.s32.totalorder %s6155_s20, %s6155_s20 }
  0x51   : > { %p6158_p10 = pnand %p6156_p9, %p6501_p7 }
  0x52   : > { %p6165_p1 = por %p6164_p4, %p6163_p12 }
  0x53   : > { %p6159_p11 = pneg %p6158_p10 }
  0x54   : > { %5940 = dma.hbm_to_vmem [thread:$0]  (!%p6491_p6), %s7192_s6, 16, %s545_s4, [#allocation7]  }
  0x55   : > { %p6166_p3 = pnand %p6165_p1, %p6159_p11 }
  0x57   : > { %6169 = shalt.err (!%p6166_p3)
}
  0x58   : > { %s7193_s11 = sld [smem:[#allocation33_spill]]  ;;  %s6341_s4 = smov [#allocation14]  }
  0x59   : > { %s605_s3 = sshll.u32 %s6341_s4, 4  ;;  %s6342_s30 = smov [#allocation15]   ;;  %s606_s3 = int_to_ptr.vmem [resolvable:$true] %s605_s3 }
  0x5a   : > { %s621_s5 = sshll.u32 %s6342_s30, 4  ;;  %s6181_s0 = scalar_lea.vmem %s606_s3, 2048  ;;  %s622_s5 = int_to_ptr.vmem [resolvable:$true] %s621_s5 }
  0x5b   : > { %p6182_p13 = scmp.ne.s32.totalorder %s606_s3, %s6181_s0  ;;  %p6189_p4 = scmp.lt.s32.totalorder %s606_s3, %s606_s3 }
  0x5c   : > { %p6190_p0 = scmp.lt.s32.totalorder %s6181_s0, %s6181_s0 }
  0x5d   : > { %p6184_p1 = pnand %p6182_p13, %p6501_p7 }
  0x5e   : > { %5946 = dma.hbm_to_vmem [thread:$0]  (!%p6491_p6), %s7193_s11, 2048, %s577_s28, [#allocation10], %s6335_s22, %s6335_s22, %s6336_s19  }
  0x5f   : > { %p6185_p3 = pneg %p6184_p1  ;;  %p6191_p2 = por %p6190_p0, %p6189_p4 }
  0x61   : > { %p6192_p5 = pnand %p6191_p2, %p6185_p3 }
  0x63   : > { %6195 = shalt.err (!%p6192_p5)
}
  0x64   : > { %s7194_s14 = sld [smem:[#allocation35_spill]]  ;;  %s6207_s18 = scalar_lea.vmem %s622_s5, 2048 }
  0x65   : > { %p6208_p8 = scmp.ne.s32.totalorder %s622_s5, %s6207_s18  ;;  %p6215_p11 = scmp.lt.s32.totalorder %s622_s5, %s622_s5 }
  0x66   : > { %p6216_p12 = scmp.lt.s32.totalorder %s6207_s18, %s6207_s18 }
  0x67   : > { %p6210_p9 = pnand %p6208_p8, %p6501_p7 }
  0x68   : > { %p6217_p13 = por %p6216_p12, %p6215_p11 }
  0x69   : > { %p6211_p10 = pneg %p6210_p9 }
  0x6a   : > { %5952 = dma.hbm_to_vmem [thread:$0]  (!%p6491_p6), %s7194_s14, 2048, %s606_s3, [#allocation13], %s6335_s22, %s6335_s22, %s6336_s19  }
  0x6b   : > { %p6218_p1 = pnand %p6217_p13, %p6211_p10 }
  0x6d   : > { %6221 = shalt.err (!%p6218_p1)
}
  0x6e   : > { %s7195_s16 = sld [smem:[#allocation36_spill]]  ;;  %s4987_s29 = sadd.s32 4294967294, %s6330_s25  }
  0x6f   : > { %s6577_s21 = sadd.s32 1, %s6330_s25   ;;  %s153_s3 = sadd.s32 1, %s6326_s2 }
  0x70   : > { %s150_s30 = ssub.s32 %s6330_s25, %s6577_s21  ;;  %p160_p7 = scmp.ne.s32.totalorder %s6326_s2, %s6322_s24 }
  0x71   : > { %p151_p3 = scmp.eq.s32.totalorder %s150_s30, 0  ;;  %p161_p4 = scmp.eq.s32.totalorder %s6330_s25, 0 }
  0x72   : > { %p166_p0 = scmp.ne.s32.totalorder %s6322_s24, %s6318_s23  ;;  %p505_p2 = scmp.eq.s32.totalorder %s6477_s26, 1 }
  0x73   : > { %s6589_s0 = scalar_select %p151_p3, %s6326_s2, %s153_s3  }
  0x74   : > { %5955 = dma.hbm_to_vmem [thread:$0]  (!%p6491_p6), %s7195_s16, 2048, %s622_s5, [#allocation16], %s6335_s22, %s6335_s22, %s6336_s19  }
  0x75   : > { %7196 = sst [smem:[#allocation24_spill]] %s6589_s0  ;;  %p162_p5 = por %p161_p4, %p160_p7 }
  0x76   : > { %p7197_p8 = scmp.eq.s32.totalorder %s6477_s26, 0  ;;  %p6597_p6 = por %p505_p2, %p160_p7 }
  0x77   : > { %p511_p10 = scmp.eq.s32.totalorder %s4987_s29, 1  ;;  %p5971_p11 = scmp.lt.s32.totalorder %s6330_s25, 2 }
  0x78   : > { %p6593_p9 = por %p7197_p8, %p166_p0  ;;  %s676_s19 = sand.u32 1, %s6326_s2  }
  0x79   : > { %s7199_s22 = scalar_select %p6597_p6, 1, 0 }
  0x7a   : > { %s7198_s28 = scalar_select %p6593_p9, 1, 0 }
  0x7b   : > { %p6603_p12 = por %p511_p10, %p166_p0  ;;  %s4997_s20 = sshll.u32 %s676_s19, 1 }
  0x7c   : > { %s4998_s18 = sshll.u32 %s6330_s25, 5  ;;  %s7201_s3 = sld [smem:[#allocation29_spill]] }
  0x7d   : > { %s7200_s5 = scalar_select %p6603_p12, 1, 0 }
  0x7e   : > { %s680_s6 = scalar_lea.vmem [#allocation3], %s4997_s20  ;;  %p6613_p13 = pnand %p5971_p11, %p162_p5 }
  0x7f   : > { %s687_s10 = sshll.u32 %s680_s6, 4  ;;  %s677_s11 = scalar_lea.sflag [#allocation4], %s676_s19  ;;  %s688_s10 = int_to_ptr.vmem [resolvable:$true] %s687_s10 }
  0x80   : > { %p6224_p7 = pneg %p6613_p13 }
  0x82   : > { %s6611_s30 = scalar_lea.hbm %s7201_s3, %s4998_s18  ;;  %s6227_s4 = scalar_lea.hbm %s7201_s3, 64 }
  0x83   : > { %s6222_s13 = scalar_lea.hbm %s6611_s30, 32  ;;  %p6228_p0 = scmp.lt.s32.totalorder %s6611_s30, %s7201_s3 }
  0x84   : > { %p6223_p1 = scmp.ne.s32.totalorder %s6611_s30, %s6222_s13  ;;  %p6229_p2 = scmp.lt.s32.totalorder %s6227_s4, %s6222_s13 }
  0x86   : > { %p6225_p3 = pnand %p6224_p7, %p6223_p1  ;;  %p6230_p5 = por %p6229_p2, %p6228_p0 }
  0x88   : > { %p6226_p4 = pneg %p6225_p3 }
  0x8a   : > { %p6231_p8 = pnand %p6230_p5, %p6226_p4 }
  0x8c   : > { %6234 = shalt.err (!%p6231_p8)
}
  0x8d   : > { %s6235_s6 = scalar_lea.vmem %s688_s10, 32  ;;  %s6343_s19 = smov [#allocation3]  }
  0x8e   : > { %p6236_p10 = scmp.ne.s32.totalorder %s688_s10, %s6235_s6  ;;  %s6240_s16 = sshll.u32 %s6343_s19, 4  ;;  %s6241_s16 = int_to_ptr.vmem [resolvable:$false] %s6240_s16 }
  0x8f   : > { %s6242_s0 = scalar_lea.vmem %s6241_s16, 64  ;;  %p6243_p1 = scmp.lt.s32.totalorder %s688_s10, %s6241_s16 }
  0x90   : > { %p6238_p11 = pnand %p6236_p10, %p6224_p7  ;;  %p6244_p3 = scmp.lt.s32.totalorder %s6242_s0, %s6235_s6 }
  0x92   : > { %p6239_p12 = pneg %p6238_p11  ;;  %p6245_p6 = por %p6244_p3, %p6243_p1 }
  0x94   : > { %p6246_p9 = pnand %p6245_p6, %p6239_p12 }
  0x96   : > { %6249 = shalt.err (!%p6246_p9)
}
  0x97   : > { %5959 = dma.hbm_to_vmem [thread:$0]  (!%p6613_p13), %s6611_s30, 32, %s688_s10, %s677_s11  }
  0x98   : > { %p7203_p4 = scmp.ne.s32.totalorder %s7186_s27, 0 }
  0x99   : > { %s6634_s13 = sand.u32 (!%p7203_p4), 1, %s6322_s24   ;;  %p7204_p7 = scmp.ne.s32.totalorder (!%p7203_p4), %s7198_s28, 0 }
  0x9a   : > { %696 = sbr.rel (%p7203_p4) target bundleno = 5616 (0x15f0), region = 100  ;;  %s5000_s14 = sshll.u32 (!%p7203_p4), %s6634_s13, 1 }
  0x9b   : > { %s699_s18 = scalar_lea.sflag (!%p7203_p4), [#allocation4], %s6634_s13  ;;  %s6638_s16 = scalar_lea.vmem (!%p7203_p4), [#allocation3], %s5000_s14 }
  0x9f   : > { %6293 = dma.done.wait (%p7204_p7), %s699_s18, 32  }
  0xa0   : > { %6295 = vsyncadd (%p7204_p7), %s699_s18, 4294967264  ;;  %p7205_p9 = scmp.eq.s32.totalorder %s6477_s26, 0 }
  0xa2   : > { %6297 = dma.done.wait (%p7205_p9), [#allocation7], 272   ;;  %p7206_p6 = pmov %p7205_p9 }
  0xa4   : > { %6299 = vsyncadd (%p7206_p6), [#allocation7], 4294967024  ;;  %p7207_p12 = pmov %p7206_p6 }
  0xa5   : > { %p7208_p13 = pmov %p7206_p6 }
  0xa6   : > { %6301 = dma.done.wait (%p7207_p12), [#allocation10], 2112  }
  0xa7   : > { %6303 = vsyncadd (%p7208_p13), [#allocation10], 4294965184  ;;  %p7209_p0 = pmov %p7206_p6 }
  0xa9   : > { %6305 = dma.done.wait (%p7209_p0), [#allocation13], 4096   ;;  %p7210_p2 = pmov %p7209_p0 }
  0xaa   : > { %p7211_p5 = pmov %p7209_p0 }
  0xab   : > { %6307 = vsyncadd (%p7210_p2), [#allocation13], 4294963200 }
  0xac   : > { %6309 = dma.done.wait (%p7211_p5), [#allocation16], 2048   ;;  %p7212_p8 = pmov %p7209_p0 }
  0xad   : > { %p806_p10 = scmp.lt.s32.totalorder %s6477_s26, 1  ;;  %vm856_vm0 = vcmask 1042432   ;;  %s7213_s28 = sld [smem:[#allocation25_spill]]  ;;  %vm849_vm1 = vcmask 89088   ;;  %v841_v1 = vld [vmem:[#allocation6 + $0x8] sm:$0x7] }
  0xae   : > { %6311 = vsyncadd (%p7212_p8), [#allocation16], 4294965248  ;;  %v840_v2 = vld [vmem:[#allocation6] sm:$0xff]  ;;  %5451 = vmatprep.subr.msk.mxu0 %vm856_vm0, %v841_v1  ;;  %v938_v4 = vld [vmem:[%s7152_s7 + $0x18] sm:$0xff]  ;;  %vm1121_vm2 = vcmask 1043456   ;;  %vm939_vm3 = vcmask 261120  }
  0xaf   : > { %s6662_s10 = scalar_select %p806_p10, %s6477_s26, 1  ;;  %5452 = vmatpush3.msk.msra.mxu0 %vm856_vm0, %v841_v1  ;;  %5458 = vmatprep.subr.mxu1 %v938_v4  ;;  %v1024_v6 = vld [vmem:[%s7153_s8 + $0x18] sm:$0xff]  ;;  %v937_v7 = vld [vmem:[%s7152_s7 + $0x10] sm:$0xff]  ;;  %v936_v9 = vld [vmem:[%s7152_s7 + $0x8] sm:$0xff]  ;;  %vm1108_vm4 = vcmask 31744   ;;  %vm1210_vm5 = vcmask 130048  }
  0xb0   : > { %5453 = vmatprep.subr.mxu0 %v840_v2  ;;  %5459 = vmatpush3.msra.mxu1 %v938_v4  ;;  %v1023_v8 = vld [vmem:[%s7153_s8 + $0x10] sm:$0xff]  ;;  %v1022_v10 = vld [vmem:[%s7153_s8 + $0x8] sm:$0xff]  ;;  %v935_v11 = vld [vmem:[%s7152_s7] sm:$0xff]  ;;  %s7216_s4 = sld [smem:[#allocation27_spill]]  ;;  %vm6345_vm6 = vmmov 0   ;;  %vm4791_vm7 = vcmask 8192  }
  0xb1   : > { %s5194_s11 = sshll.u32 %s6662_s10, 4  ;;  %5454 = vmatpush3.msra.mxu0 %v840_v2  ;;  %5460 = vmatprep.subr.mxu1 %v937_v7  ;;  %v1021_v12 = vld [vmem:[%s7153_s8] sm:$0xff]  ;;  %s5195_s19 = sshll.u32 %s6662_s10, 5  ;;  %v5016_v15 = vld [vmem:[#allocation8] ss:$0 sm:$0xff]  ;;  %v1415_v36 = vld [vmem:[#allocation11 + $0x10] sm:$0xff] }
  0xb2   : > { %5469 = vmatprep.subr.mxu0 %v1024_v6  ;;  %5461 = vmatpush3.msra.mxu1 %v937_v7  ;;  %v1100_v13 = vld [vmem:[%s7154_s9] sm:$0xf]  ;;  %v1416_v35 = vld [vmem:[#allocation11 + $0x18] sm:$0xff]  ;;  %s7217_s6 = sld [smem:[#allocation37_spill]]  ;;  %p7219_p1 = scmp.ne.s32.totalorder %s7199_s22, 0 }
  0xb3   : > { %s810_s30 = scalar_lea.vmem %s7213_s28, %s5194_s11  ;;  %5462 = vmatprep.subr.mxu1 %v936_v9  ;;  %s7214_s11 = sld [smem:[#allocation26_spill]]  ;;  %v1414_v37 = vld [vmem:[#allocation11 + $0x8] sm:$0xff]  ;;  %v1413_v38 = vld [vmem:[#allocation11] sm:$0xff]  ;;  %v5024_v43 = vld [vmem:[#allocation9] ss:$0 sm:$0xff] }
  0xb4   : > { %v826_v3 = vld [vmem:[%s810_s30] sm:$0xff]  ;;  %v827_v5 = vld [vmem:[%s810_s30 + $0x8] sm:$0xff]  ;;  %5463 = vmatpush3.msra.mxu1 %v936_v9  ;;  %s7215_s28 = sld [smem:[#allocation28_spill]] }
  0xb5   : > { %5455 = vmatprep.mubr.msk.f32.mxu0 %vm849_vm1, %v826_v3  ;;  %5464 = vmatprep.subr.mxu1 %v935_v11  ;;  %v5038_v9 = vld [vmem:[%s7157_s12] ss:$0 sm:$0xff]  ;;  %s7218_s10 = sld [smem:[#allocation38_spill]] }
  0xb6   : > { %5456 = vmatmul.mubr.msk.f32.vlgmr.msra.gmra.mxu0 %vm849_vm1, %v827_v5  ;;  %5465 = vmatpush3.msra.mxu1 %v935_v11  ;;  %s6743_s20 = scalar_lea.vmem %s7216_s4, %s5195_s19  ;;  %v1645_v5 = vld [vmem:[#allocation14 + $0x18] sm:$0xff] }
  0xb7   : > { %5470 = vmatpush3.msra.mxu0 %v1024_v6  ;;  %5480 = vmatprep.subr.msk.mxu1 %vm1121_vm2, %v1100_v13  ;;  %v6746_v23 = vld [vmem:[%s6743_s20] sm:$0xff]  ;;  %v6769_v32 = vld [vmem:[%s6743_s20 + $0x8] sm:$0xff]  ;;  %v6772_v33 = vld [vmem:[%s6743_s20 + $0x10] sm:$0xff] }
  0xb8   : > { %5471 = vmatprep.subr.mxu0 %v1023_v8  ;;  %v6783_v34 = vld [vmem:[%s6743_s20 + $0x18] sm:$0xff]  ;;  %v1644_v6 = vld [vmem:[#allocation14 + $0x10] sm:$0xff] }
  0xb9   : > { %5472 = vmatpush3.msra.mxu0 %v1023_v8  ;;  %s6700_s27 = scalar_lea.vmem %s7214_s11, %s5195_s19 }
  0xba   : > { %5473 = vmatprep.subr.mxu0 %v1022_v10  ;;  %v6707_v19 = vld [vmem:[%s6700_s27] sm:$0xff]  ;;  %v6721_v20 = vld [vmem:[%s6700_s27 + $0x8] sm:$0xff]  ;;  %v6724_v21 = vld [vmem:[%s6700_s27 + $0x10] sm:$0xff]  ;;  %s6738_s30 = scalar_lea.vmem %s7215_s28, %s5195_s19  ;;  %s805_s19 = scalar_lea.vmem [#allocation17], %s6634_s13 }
  0xbb   : > { %5474 = vmatpush3.msra.mxu0 %v1022_v10  ;;  %v6731_v22 = vld [vmem:[%s6700_s27 + $0x18] sm:$0xff]  ;;  %v6749_v24 = vld [vmem:[%s6738_s30] sm:$0xff]  ;;  %v6757_v25 = vld [vmem:[%s6738_s30 + $0x8] sm:$0xff]  ;;  %s4806_s14 = sshll.u32 %s805_s19, 4  ;;  %s4807_s14 = int_to_ptr.vmem [resolvable:$true] %s4806_s14 }
  0xbc   : > { %5475 = vmatprep.subr.mxu0 %v1021_v12  ;;  %1525 = vxpose.xlu0.b32.start [1/4] (short) (narrow) %v6749_v24, 16  ;;  %v6761_v26 = vld [vmem:[%s6738_s30 + $0x10] sm:$0xff]  ;;  %v6765_v27 = vld [vmem:[%s6738_s30 + $0x18] sm:$0xff] }
  0xbd   : > { %5476 = vmatpush3.msra.mxu0 %v1021_v12 }
  0xc0   : > { %1526 = vxpose.xlu0.b32.cont [2/4] (short) (narrow) %v6757_v25, 16 }
  0xc4   : > { %1527 = vxpose.xlu0.b32.cont [3/4] (short) (narrow) %v6761_v26, 16 }
  0xc8   : > { %1528 = vxpose.xlu0.b32.end [4/4] (short) (narrow) %v6765_v27, 16 }
 0x138   : > { %v6793_v4 = vpop.trf.xlu0 }
 0x176   : > { %v5457_v14 = vpop.f32.mrf.mxu0 }
 0x177   : > { %v6704_v18 = vadd.f32 %v5457_v14, %v5016_v15 }
 0x178   : > { %v926_v16 = vpop.f32.mrf.mxu0 }
 0x179   : > { %v6702_v17 = vadd.f32 %v5016_v15, %v926_v16 }
 0x17b   : > { %5466 = vmatprep.mubr.msk.f32.mxu1 %vm939_vm3, %v6702_v17  ;;  %5477 = vmatprep.mubr.msk.f32.mxu0 %vm939_vm3, %v6702_v17 }
 0x17c   : > { %5467 = vmatmul.mubr.msk.f32.vlgmr.msra.gmra.mxu1 %vm939_vm3, %v6704_v18  ;;  %5478 = vmatmul.mubr.msk.f32.vlgmr.msra.gmra.mxu0 %vm939_vm3, %v6704_v18 }
 0x17d   : > { %5481 = vmatpush3.msk.msra.mxu1 %vm1121_vm2, %v1100_v13  ;;  %5482 = vmatprep.mubr.msk.f32.mxu1 %vm1108_vm4, %v6707_v19 }
 0x17e   : > { %5492 = vmatprep.mubr.msk.f32.mxu0 %vm1210_vm5, %v6746_v23 }
 0x180   : > { %5483 = vmatmul.mubr.msk.f32.vlgmr.msra.gmra.mxu1 %vm1108_vm4, %v6721_v20 }
 0x181   : > { %5485 = vmatprep.mubr.msk.f32.mxu1 %vm1108_vm4, %v6724_v21 }
 0x184   : > { %5486 = vmatmul.mubr.msk.f32.gmra.mxu1 %vm1108_vm4, %v6731_v22 }
 0x185   : > { %5502 = vmatprep.mubr.msk.f32.mxu1 %vm1210_vm5, %v6749_v24 }
 0x23c   : > { %v5468_v28 = vpop.f32.mrf.mxu1  ;;  %v5479_v29 = vpop.f32.mrf.mxu0 }
 0x23d   : > { %5488 = vmatprep.subr.mxu0 %v5479_v29  ;;  %5498 = vmatprep.subr.mxu1 %v5468_v28 }
 0x23e   : > { %v1012_v30 = vpop.f32.mrf.mxu1  ;;  %v1091_v31 = vpop.f32.mrf.mxu0  ;;  %5489 = vmatpush3.msra.mxu0 %v5479_v29  ;;  %5499 = vmatpush3.msra.mxu1 %v5468_v28 }
 0x23f   : > { %5490 = vmatprep.subr.mxu0 %v1091_v31  ;;  %5500 = vmatprep.subr.mxu1 %v1012_v30 }
 0x240   : > { %5491 = vmatpush3.msra.mxu0 %v1091_v31  ;;  %5501 = vmatpush3.msra.mxu1 %v1012_v30  ;;  %v5484_v39 = vpop.f32.mrf.mxu1  ;;  %v6800_v31 = vpop.trf.xlu0 }
 0x241   : > { %5493 = vmatmul.mubr.msk.f32.vlgmr.msra.gmra.mxu0 %vm1210_vm5, %v6769_v32  ;;  %5503 = vmatmul.mubr.msk.f32.vlgmr.msra.gmra.mxu1 %vm1210_vm5, %v6757_v25  ;;  %v1197_v47 = vadd.f32 %v5484_v39, %v5024_v43  ;;  %v1643_v39 = vld [vmem:[#allocation14 + $0x8] sm:$0xff] }
 0x242   : > { %5495 = vmatprep.mubr.msk.f32.mxu0 %vm1210_vm5, %v6772_v33  ;;  %5505 = vmatprep.mubr.msk.f32.mxu1 %vm1210_vm5, %v6761_v26  ;;  %v1191_v40 = vpop.f32.mrf.mxu1 }
 0x243   : > { %5508 = vmatprep.subr.mxu0 %v1416_v35  ;;  %v1192_v50 = vadd.f32 %v5024_v43, %v1191_v40  ;;  %v1642_v40 = vld [vmem:[#allocation14] sm:$0xff] }
 0x244   : > { %5509 = vmatpush3.msra.mxu0 %v1416_v35  ;;  %v5487_v41 = vpop.f32.mrf.mxu1  ;;  %v1641_v35 = vld [vmem:[#allocation12 + $0x18] sm:$0xff] }
 0x245   : > { %5496 = vmatmul.mubr.msk.f32.gmra.mxu0 %vm1210_vm5, %v6783_v34  ;;  %5506 = vmatmul.mubr.msk.f32.gmra.mxu1 %vm1210_vm5, %v6765_v27  ;;  %v1207_v57 = vadd.f32 %v5487_v41, %v5024_v43 }
 0x246   : > { %5510 = vmatprep.subr.mxu0 %v1415_v36  ;;  %v1201_v42 = vpop.f32.mrf.mxu1  ;;  %5530 = vmatprep.mubr.msk.f32.mxu1 %vm939_vm3, %v6793_v4 }
 0x247   : > { %5511 = vmatpush3.msra.mxu0 %v1415_v36  ;;  %v1202_v60 = vadd.f32 %v5024_v43, %v1201_v42  ;;  %v1640_v36 = vld [vmem:[#allocation12 + $0x10] sm:$0xff]  ;;  %v1816_v43 = vld [vmem:[#allocation15 + $0x18] sm:$0xff] }
 0x248   : > { %5512 = vmatprep.subr.mxu0 %v1414_v37 }
 0x249   : > { %5513 = vmatpush3.msra.mxu0 %v1414_v37  ;;  %v1639_v37 = vld [vmem:[#allocation12 + $0x8] sm:$0xff] }
 0x24a   : > { %5514 = vmatprep.subr.mxu0 %v1413_v38 }
 0x24b   : > { %5515 = vmatpush3.msra.mxu0 %v1413_v38  ;;  %v1638_v38 = vld [vmem:[#allocation12] sm:$0xff] }
 0x24c   : > { %5533 = vmatprep.subr.mxu0 %v1645_v5 }
 0x301   : > { %v5494_v44 = vpop.f32.mrf.mxu0  ;;  %v5504_v45 = vpop.f32.mrf.mxu1 }
 0x302   : > { %v1392_v46 = vadd.f32 %v5504_v45, %v5494_v44  ;;  %v1815_v44 = vld [vmem:[#allocation15 + $0x10] sm:$0xff]  ;;  %v1814_v45 = vld [vmem:[#allocation15 + $0x8] sm:$0xff] }
 0x303   : > { %v1289_v48 = vpop.f32.mrf.mxu0  ;;  %v1386_v49 = vpop.f32.mrf.mxu1 }
 0x304   : > { %v1387_v51 = vadd.f32 %v1386_v49, %v1289_v48  ;;  %v1406_v52 = vadd.f32 %v1392_v46, %v1197_v47  ;;  %v1813_v46 = vld [vmem:[#allocation15] sm:$0xff] }
 0x305   : > { %v5497_v53 = vpop.f32.mrf.mxu0  ;;  %v5507_v54 = vpop.f32.mrf.mxu1 }
 0x306   : > { %v1405_v55 = vadd.f32 %v1387_v51, %v1192_v50  ;;  %v1402_v56 = vadd.f32 %v5507_v54, %v5497_v53  ;;  %v1410_v63 = vmax.f32 %v1406_v52, 0.0  ;;  %v5049_v50 = vld [vmem:[%s7160_s15] ss:$0 sm:$0xff] }
 0x307   : > { %v1299_v58 = vpop.f32.mrf.mxu0  ;;  %v1396_v59 = vpop.f32.mrf.mxu1 }
 0x308   : > { %v1409_v61 = vmax.f32 %v1405_v55, 0.0  ;;  %v1397_v62 = vadd.f32 %v1396_v59, %v1299_v58  ;;  %v1408_v0 = vadd.f32 %v1402_v56, %v1207_v57  ;;  %v5056_v58 = vld [vmem:[%s7152_s7 + $0x38] sm:$0xff] }
 0x309   : > { %v5062_v59 = vld [vmem:[%s7153_s8 + $0x38] sm:$0xff] }
 0x30a   : > { %v1407_v1 = vadd.f32 %v1397_v62, %v1202_v60  ;;  %5516 = vmatprep.mubr.msk.f32.mxu0 %vm939_vm3, %v1409_v61  ;;  %v1412_v3 = vmax.f32 %v1408_v0, 0.0  ;;  %v5055_v60 = vld [vmem:[%s7152_s7 + $0x30] sm:$0xff]  ;;  %v5054_v62 = vld [vmem:[%s7152_s7 + $0x28] sm:$0xff]  ;;  %v5053_v0 = vld [vmem:[%s7152_s7 + $0x20] sm:$0xff] }
 0x30b   : > { %5517 = vmatmul.mubr.msk.f32.vlgmr.msra.gmra.mxu0 %vm939_vm3, %v1410_v63  ;;  %v5061_v61 = vld [vmem:[%s7153_s8 + $0x30] sm:$0xff]  ;;  %v5060_v63 = vld [vmem:[%s7153_s8 + $0x28] sm:$0xff] }
 0x30c   : > { %v1411_v2 = vmax.f32 %v1407_v1, 0.0  ;;  %5534 = vmatpush3.msra.mxu0 %v1645_v5  ;;  %v5059_v1 = vld [vmem:[%s7153_s8 + $0x20] sm:$0xff] }
 0x30d   : > { %5535 = vmatprep.subr.mxu0 %v1644_v6 }
 0x30e   : > { %5519 = vmatprep.mubr.msk.f32.mxu0 %vm939_vm3, %v1411_v2  ;;  %5536 = vmatpush3.msra.mxu0 %v1644_v6  ;;  %v5065_v2 = vld [vmem:[%s7154_s9 + $0x4] sm:$0xf] }
 0x30f   : > { %5520 = vmatmul.mubr.msk.f32.gmra.mxu0 %vm939_vm3, %v1412_v3  ;;  %5537 = vmatprep.subr.mxu0 %v1643_v39  ;;  %v5050_v3 = vld [vmem:[%s7162_s17] ss:$0 sm:$0xff] }
 0x310   : > { %5538 = vmatpush3.msra.mxu0 %v1643_v39 }
 0x311   : > { %5539 = vmatprep.subr.mxu0 %v1642_v40 }
 0x312   : > { %5540 = vmatpush3.msra.mxu0 %v1642_v40 }
 0x313   : > { %5555 = vmatprep.subr.mxu0 %v1816_v43 }
 0x3cb   : > { %v5518_v7 = vpop.f32.mrf.mxu0 }
 0x3cc   : > { %v1508_v13 = vadd.f32 %v5518_v7, %v5038_v9 }
 0x3cd   : > { %v1502_v8 = vpop.f32.mrf.mxu0 }
 0x3ce   : > { %v1503_v16 = vadd.f32 %v5038_v9, %v1502_v8  ;;  %v1522_v29 = vmax.f32 %v1508_v13, 0.0 }
 0x3cf   : > { %v5521_v10 = vpop.f32.mrf.mxu0 }
 0x3d0   : > { %v1518_v11 = vadd.f32 %v5521_v10, %v5038_v9  ;;  %v1521_v30 = vmax.f32 %v1503_v16, 0.0  ;;  %v2354_v16 = vld [vmem:[#allocation11 + $0x30] sm:$0xff] }
 0x3d1   : > { %v1512_v12 = vpop.f32.mrf.mxu0 }
 0x3d2   : > { %v1524_v14 = vmax.f32 %v1518_v11, 0.0  ;;  %v1513_v15 = vadd.f32 %v5038_v9, %v1512_v12 }
 0x3d4   : > { %v1523_v28 = vmax.f32 %v1513_v15, 0.0  ;;  %5522 = vmatprep.subr.mxu1 %v1524_v14  ;;  %v2355_v15 = vld [vmem:[#allocation11 + $0x38] sm:$0xff] }
 0x3d5   : > { %5523 = vmatpush3.msra.mxu1 %v1524_v14 }
 0x3d6   : > { %5524 = vmatprep.subr.mxu1 %v1523_v28 }
 0x3d7   : > { %5525 = vmatpush3.msra.mxu1 %v1523_v28  ;;  %v2353_v28 = vld [vmem:[#allocation11 + $0x28] sm:$0xff] }
 0x3d8   : > { %5526 = vmatprep.subr.mxu1 %v1522_v29 }
 0x3d9   : > { %5527 = vmatpush3.msra.mxu1 %v1522_v29  ;;  %v2352_v29 = vld [vmem:[#allocation11 + $0x20] sm:$0xff] }
 0x3da   : > { %5528 = vmatprep.subr.mxu1 %v1521_v30 }
 0x3db   : > { %5529 = vmatpush3.msra.mxu1 %v1521_v30 }
 0x3dc   : > { %5531 = vmatmul.mubr.msk.f32.vlgmr.msra.gmra.mxu1 %vm939_vm3, %v6800_v31  ;;  %5544 = vmatprep.subr.mxu1 %v1641_v35 }
 0x3dd   : > { %5545 = vmatpush3.msra.mxu1 %v1641_v35  ;;  %5552 = vmatprep.mubr.msk.f32.mxu1 %vm939_vm3, %v6702_v17 }
 0x3de   : > { %5546 = vmatprep.subr.mxu1 %v1640_v36 }
 0x3df   : > { %5547 = vmatpush3.msra.mxu1 %v1640_v36 }
 0x3e0   : > { %5548 = vmatprep.subr.mxu1 %v1639_v37 }
 0x3e1   : > { %5549 = vmatpush3.msra.mxu1 %v1639_v37 }
 0x3e2   : > { %5550 = vmatprep.subr.mxu1 %v1638_v38 }
 0x3e3   : > { %5551 = vmatpush3.msra.mxu1 %v1638_v38  ;;  %v5066_v38 = vld [vmem:[#allocation9 + $0x1] ss:$0 sm:$0xff] }
 0x3e4   : > { %5553 = vmatmul.mubr.msk.f32.vlgmr.msra.gmra.mxu1 %vm939_vm3, %v6704_v18  ;;  %5566 = vmatprep.subr.mxu1 %v5056_v58 }
 0x3e5   : > { %5567 = vmatpush3.msra.mxu1 %v5056_v58 }
 0x3e6   : > { %5568 = vmatprep.subr.mxu1 %v5055_v60 }
 0x3e7   : > { %5569 = vmatpush3.msra.mxu1 %v5055_v60 }
 0x3e8   : > { %5570 = vmatprep.subr.mxu1 %v5054_v62 }
 0x3e9   : > { %5571 = vmatpush3.msra.mxu1 %v5054_v62 }
 0x3ea   : > { %5572 = vmatprep.subr.mxu1 %v5053_v0 }
 0x3eb   : > { %5573 = vmatpush3.msra.mxu1 %v5053_v0  ;;  %v2548_v0 = vld [vmem:[#allocation14 + $0x30] sm:$0xff] }
 0x3ec   : > { %5588 = vmatprep.subr.msk.mxu1 %vm1121_vm2, %v5065_v2 }
 0x49c   : > { %v5532_v41 = vpop.f32.mrf.mxu1 }
 0x49e   : > { %v1629_v42 = vpop.f32.mrf.mxu1 }
 0x49f   : > { %5541 = vmatprep.mubr.msk.f32.mxu0 %vm939_vm3, %v1629_v42 }
 0x4a0   : > { %5542 = vmatmul.mubr.msk.f32.vlgmr.msra.gmra.mxu0 %vm939_vm3, %v5532_v41 }
 0x4a1   : > { %5556 = vmatpush3.msra.mxu0 %v1816_v43 }
 0x4a2   : > { %5557 = vmatprep.subr.mxu0 %v1815_v44 }
 0x4a3   : > { %5558 = vmatpush3.msra.mxu0 %v1815_v44 }
 0x4a4   : > { %5559 = vmatprep.subr.mxu0 %v1814_v45  ;;  %v5554_v47 = vpop.f32.mrf.mxu1 }
 0x4a5   : > { %5560 = vmatpush3.msra.mxu0 %v1814_v45 }
 0x4a6   : > { %5561 = vmatprep.subr.mxu0 %v1813_v46  ;;  %v1793_v51 = vpop.f32.mrf.mxu1 }
 0x4a7   : > { %5562 = vmatpush3.msra.mxu0 %v1813_v46 }
 0x4a8   : > { %5577 = vmatprep.subr.mxu0 %v5062_v59 }
 0x560   : > { %v5543_v48 = vpop.f32.mrf.mxu0 }
 0x561   : > { %v1799_v49 = vadd.f32 %v5554_v47, %v5543_v48 }
 0x562   : > { %v1718_v52 = vpop.f32.mrf.mxu0 }
 0x563   : > { %v1794_v53 = vadd.f32 %v1793_v51, %v1718_v52  ;;  %v1810_v54 = vadd.f32 %v5049_v50, %v1799_v49 }
 0x565   : > { %v1809_v55 = vadd.f32 %v5049_v50, %v1794_v53  ;;  %v1812_v57 = vmax.f32 %v1810_v54, 0.0 }
 0x567   : > { %v1811_v56 = vmax.f32 %v1809_v55, 0.0 }
 0x569   : > { %5563 = vmatprep.mubr.msk.f32.mxu0 %vm939_vm3, %v1811_v56 }
 0x56a   : > { %5564 = vmatmul.mubr.msk.f32.vlgmr.msra.gmra.mxu0 %vm939_vm3, %v1812_v57 }
 0x56b   : > { %5578 = vmatpush3.msra.mxu0 %v5062_v59 }
 0x56c   : > { %5579 = vmatprep.subr.mxu0 %v5061_v61 }
 0x56d   : > { %5580 = vmatpush3.msra.mxu0 %v5061_v61 }
 0x56e   : > { %5581 = vmatprep.subr.mxu0 %v5060_v63 }
 0x56f   : > { %5582 = vmatpush3.msra.mxu0 %v5060_v63  ;;  %v2549_v63 = vld [vmem:[#allocation14 + $0x38] sm:$0xff] }
 0x570   : > { %5583 = vmatprep.subr.mxu0 %v5059_v1 }
 0x571   : > { %5584 = vmatpush3.msra.mxu0 %v5059_v1 }
 0x62a   : > { %v5565_v5 = vpop.f32.mrf.mxu0 }
 0x62b   : > { %v1902_v6 = vadd.f32 %v5565_v5, %v5050_v3 }
 0x62c   : > { %v1896_v7 = vpop.f32.mrf.mxu0 }
 0x62d   : > { %v1897_v8 = vadd.f32 %v5050_v3, %v1896_v7  ;;  %v1906_v9 = vmax.f32 %v1902_v6, 0.0  ;;  %v5081_v3 = vld [vmem:[%s7157_s12 + $0x1] ss:$0 sm:$0xff] }
 0x62f   : > { %v1905_v10 = vmax.f32 %v1897_v8, 0.0  ;;  %v6850_v12 = vadd.f32 %v1906_v9, %v6704_v18 }
 0x631   : > { %v6847_v11 = vadd.f32 %v1905_v10, %v6702_v17 }
 0x633   : > { %5574 = vmatprep.mubr.msk.f32.mxu1 %vm939_vm3, %v6847_v11  ;;  %5585 = vmatprep.mubr.msk.f32.mxu0 %vm939_vm3, %v6847_v11 }
 0x634   : > { %5575 = vmatmul.mubr.msk.f32.vlgmr.msra.gmra.mxu1 %vm939_vm3, %v6850_v12  ;;  %5586 = vmatmul.mubr.msk.f32.vlgmr.msra.gmra.mxu0 %vm939_vm3, %v6850_v12 }
 0x635   : > { %5589 = vmatpush3.msk.msra.mxu1 %vm1121_vm2, %v5065_v2  ;;  %5590 = vmatprep.mubr.msk.f32.mxu1 %vm1108_vm4, %v6707_v19 }
 0x636   : > { %5600 = vmatprep.mubr.msk.f32.mxu0 %vm1210_vm5, %v6746_v23 }
 0x638   : > { %5591 = vmatmul.mubr.msk.f32.vlgmr.msra.gmra.mxu1 %vm1108_vm4, %v6721_v20 }
 0x639   : > { %5593 = vmatprep.mubr.msk.f32.mxu1 %vm1108_vm4, %v6724_v21 }
 0x63c   : > { %5594 = vmatmul.mubr.msk.f32.gmra.mxu1 %vm1108_vm4, %v6731_v22 }
 0x63d   : > { %5610 = vmatprep.mubr.msk.f32.mxu1 %vm1210_vm5, %v6749_v24 }
 0x6f4   : > { %v5576_v17 = vpop.f32.mrf.mxu1  ;;  %v5587_v18 = vpop.f32.mrf.mxu0 }
 0x6f5   : > { %5596 = vmatprep.subr.mxu0 %v5587_v18  ;;  %5606 = vmatprep.subr.mxu1 %v5576_v17 }
 0x6f6   : > { %v1986_v13 = vpop.f32.mrf.mxu1  ;;  %v2066_v14 = vpop.f32.mrf.mxu0  ;;  %5597 = vmatpush3.msra.mxu0 %v5587_v18  ;;  %5607 = vmatpush3.msra.mxu1 %v5576_v17 }
 0x6f7   : > { %5598 = vmatprep.subr.mxu0 %v2066_v14  ;;  %5608 = vmatprep.subr.mxu1 %v1986_v13 }
 0x6f8   : > { %5599 = vmatpush3.msra.mxu0 %v2066_v14  ;;  %5609 = vmatpush3.msra.mxu1 %v1986_v13  ;;  %v5592_v30 = vpop.f32.mrf.mxu1 }
 0x6f9   : > { %5601 = vmatmul.mubr.msk.f32.vlgmr.msra.gmra.mxu0 %vm1210_vm5, %v6769_v32  ;;  %5611 = vmatmul.mubr.msk.f32.vlgmr.msra.gmra.mxu1 %vm1210_vm5, %v6757_v25  ;;  %v2160_v42 = vadd.f32 %v5592_v30, %v5066_v38  ;;  %v2547_v30 = vld [vmem:[#allocation14 + $0x28] sm:$0xff] }
 0x6fa   : > { %5603 = vmatprep.mubr.msk.f32.mxu0 %vm1210_vm5, %v6772_v33  ;;  %5613 = vmatprep.mubr.msk.f32.mxu1 %vm1210_vm5, %v6761_v26  ;;  %v2154_v35 = vpop.f32.mrf.mxu1 }
 0x6fb   : > { %5616 = vmatprep.subr.mxu0 %v2355_v15  ;;  %v2155_v45 = vadd.f32 %v5066_v38, %v2154_v35  ;;  %v2546_v35 = vld [vmem:[#allocation14 + $0x20] sm:$0xff] }
 0x6fc   : > { %5617 = vmatpush3.msra.mxu0 %v2355_v15  ;;  %v5595_v36 = vpop.f32.mrf.mxu1  ;;  %v2544_v15 = vld [vmem:[#allocation12 + $0x38] sm:$0xff] }
 0x6fd   : > { %5604 = vmatmul.mubr.msk.f32.gmra.mxu0 %vm1210_vm5, %v6783_v34  ;;  %5614 = vmatmul.mubr.msk.f32.gmra.mxu1 %vm1210_vm5, %v6765_v27  ;;  %v2170_v52 = vadd.f32 %v5595_v36, %v5066_v38 }
 0x6fe   : > { %5638 = vmatprep.mubr.msk.f32.mxu1 %vm939_vm3, %v6793_v4  ;;  %5618 = vmatprep.subr.mxu0 %v2354_v16  ;;  %v2164_v37 = vpop.f32.mrf.mxu1 }
 0x6ff   : > { %5619 = vmatpush3.msra.mxu0 %v2354_v16  ;;  %v2165_v55 = vadd.f32 %v5066_v38, %v2164_v37  ;;  %v2543_v16 = vld [vmem:[#allocation12 + $0x30] sm:$0xff]  ;;  %v2722_v38 = vld [vmem:[#allocation15 + $0x38] sm:$0xff] }
 0x700   : > { %5620 = vmatprep.subr.mxu0 %v2353_v28 }
 0x701   : > { %5621 = vmatpush3.msra.mxu0 %v2353_v28  ;;  %v2542_v28 = vld [vmem:[#allocation12 + $0x28] sm:$0xff] }
 0x702   : > { %5622 = vmatprep.subr.mxu0 %v2352_v29 }
 0x703   : > { %5623 = vmatpush3.msra.mxu0 %v2352_v29  ;;  %v2541_v29 = vld [vmem:[#allocation12 + $0x20] sm:$0xff] }
 0x704   : > { %5641 = vmatprep.subr.mxu0 %v2549_v63 }
 0x7b9   : > { %v5602_v39 = vpop.f32.mrf.mxu0  ;;  %v5612_v40 = vpop.f32.mrf.mxu1 }
 0x7ba   : > { %v2330_v41 = vadd.f32 %v5612_v40, %v5602_v39  ;;  %v2721_v39 = vld [vmem:[#allocation15 + $0x30] sm:$0xff]  ;;  %v2720_v40 = vld [vmem:[#allocation15 + $0x28] sm:$0xff] }
 0x7bb   : > { %v2239_v43 = vpop.f32.mrf.mxu0  ;;  %v2324_v44 = vpop.f32.mrf.mxu1 }
 0x7bc   : > { %v2325_v46 = vadd.f32 %v2324_v44, %v2239_v43  ;;  %v2344_v47 = vadd.f32 %v2330_v41, %v2160_v42  ;;  %v2719_v41 = vld [vmem:[#allocation15 + $0x20] sm:$0xff] }
 0x7bd   : > { %v5605_v48 = vpop.f32.mrf.mxu0  ;;  %v5615_v49 = vpop.f32.mrf.mxu1 }
 0x7be   : > { %v2343_v50 = vadd.f32 %v2325_v46, %v2155_v45  ;;  %v2340_v51 = vadd.f32 %v5615_v49, %v5605_v48  ;;  %v2348_v58 = vmax.f32 %v2344_v47, 0.0  ;;  %v5093_v45 = vld [vmem:[%s7160_s15 + $0x1] ss:$0 sm:$0xff] }
 0x7bf   : > { %v2249_v53 = vpop.f32.mrf.mxu0  ;;  %v2334_v54 = vpop.f32.mrf.mxu1 }
 0x7c0   : > { %v2347_v56 = vmax.f32 %v2343_v50, 0.0  ;;  %v2335_v57 = vadd.f32 %v2334_v54, %v2249_v53  ;;  %v2346_v59 = vadd.f32 %v2340_v51, %v2170_v52  ;;  %v5101_v53 = vld [vmem:[%s7152_s7 + $0x58] sm:$0xff] }
 0x7c1   : > { %v5107_v54 = vld [vmem:[%s7153_s8 + $0x58] sm:$0xff] }
 0x7c2   : > { %v2345_v60 = vadd.f32 %v2335_v57, %v2165_v55  ;;  %5624 = vmatprep.mubr.msk.f32.mxu0 %vm939_vm3, %v2347_v56  ;;  %v2350_v62 = vmax.f32 %v2346_v59, 0.0  ;;  %v5100_v55 = vld [vmem:[%s7152_s7 + $0x50] sm:$0xff]  ;;  %v5099_v57 = vld [vmem:[%s7152_s7 + $0x48] sm:$0xff]  ;;  %v5098_v59 = vld [vmem:[%s7152_s7 + $0x40] sm:$0xff] }
 0x7c3   : > { %5625 = vmatmul.mubr.msk.f32.vlgmr.msra.gmra.mxu0 %vm939_vm3, %v2348_v58  ;;  %v5106_v56 = vld [vmem:[%s7153_s8 + $0x50] sm:$0xff]  ;;  %v5105_v58 = vld [vmem:[%s7153_s8 + $0x48] sm:$0xff] }
 0x7c4   : > { %v2349_v61 = vmax.f32 %v2345_v60, 0.0  ;;  %5642 = vmatpush3.msra.mxu0 %v2549_v63  ;;  %v5104_v60 = vld [vmem:[%s7153_s8 + $0x40] sm:$0xff] }
 0x7c5   : > { %5643 = vmatprep.subr.mxu0 %v2548_v0 }
 0x7c6   : > { %5627 = vmatprep.mubr.msk.f32.mxu0 %vm939_vm3, %v2349_v61  ;;  %5644 = vmatpush3.msra.mxu0 %v2548_v0  ;;  %v5110_v61 = vld [vmem:[%s7154_s9 + $0x8] sm:$0xf] }
 0x7c7   : > { %5628 = vmatmul.mubr.msk.f32.gmra.mxu0 %vm939_vm3, %v2350_v62  ;;  %5645 = vmatprep.subr.mxu0 %v2547_v30  ;;  %v5095_v62 = vld [vmem:[%s7162_s17 + $0x1] ss:$0 sm:$0xff] }
 0x7c8   : > { %5646 = vmatpush3.msra.mxu0 %v2547_v30 }
 0x7c9   : > { %5647 = vmatprep.subr.mxu0 %v2546_v35 }
 0x7ca   : > { %5648 = vmatpush3.msra.mxu0 %v2546_v35 }
 0x7cb   : > { %5663 = vmatprep.subr.mxu0 %v2722_v38 }
 0x883   : > { %v5626_v1 = vpop.f32.mrf.mxu0 }
 0x884   : > { %v2448_v8 = vadd.f32 %v5626_v1, %v5081_v3 }
 0x885   : > { %v2442_v2 = vpop.f32.mrf.mxu0 }
 0x886   : > { %v2443_v17 = vadd.f32 %v5081_v3, %v2442_v2  ;;  %v2462_v13 = vmax.f32 %v2448_v8, 0.0 }
 0x887   : > { %v5629_v5 = vpop.f32.mrf.mxu0 }
 0x888   : > { %v2458_v6 = vadd.f32 %v5629_v5, %v5081_v3  ;;  %v2461_v14 = vmax.f32 %v2443_v17, 0.0 }
 0x889   : > { %v2452_v7 = vpop.f32.mrf.mxu0 }
 0x88a   : > { %v2464_v9 = vmax.f32 %v2458_v6, 0.0  ;;  %v2453_v10 = vadd.f32 %v5081_v3, %v2452_v7 }
 0x88c   : > { %v2463_v18 = vmax.f32 %v2453_v10, 0.0  ;;  %5630 = vmatprep.subr.mxu1 %v2464_v9 }
 0x88d   : > { %5631 = vmatpush3.msra.mxu1 %v2464_v9 }
 0x88e   : > { %5632 = vmatprep.subr.mxu1 %v2463_v18 }
 0x88f   : > { %5633 = vmatpush3.msra.mxu1 %v2463_v18 }
 0x890   : > { %5634 = vmatprep.subr.mxu1 %v2462_v13 }
 0x891   : > { %5635 = vmatpush3.msra.mxu1 %v2462_v13 }
 0x892   : > { %5636 = vmatprep.subr.mxu1 %v2461_v14 }
 0x893   : > { %5637 = vmatpush3.msra.mxu1 %v2461_v14 }
 0x894   : > { %5639 = vmatmul.mubr.msk.f32.vlgmr.msra.gmra.mxu1 %vm939_vm3, %v6800_v31  ;;  %5652 = vmatprep.subr.mxu1 %v2544_v15 }
 0x895   : > { %5653 = vmatpush3.msra.mxu1 %v2544_v15  ;;  %5660 = vmatprep.mubr.msk.f32.mxu1 %vm939_vm3, %v6847_v11 }
 0x896   : > { %5654 = vmatprep.subr.mxu1 %v2543_v16 }
 0x897   : > { %5655 = vmatpush3.msra.mxu1 %v2543_v16 }
 0x898   : > { %5656 = vmatprep.subr.mxu1 %v2542_v28 }
 0x899   : > { %5657 = vmatpush3.msra.mxu1 %v2542_v28 }
 0x89a   : > { %5658 = vmatprep.subr.mxu1 %v2541_v29 }
 0x89b   : > { %5659 = vmatpush3.msra.mxu1 %v2541_v29 }
 0x89c   : > { %5661 = vmatmul.mubr.msk.f32.vlgmr.msra.gmra.mxu1 %vm939_vm3, %v6850_v12  ;;  %5674 = vmatprep.subr.mxu1 %v5101_v53 }
 0x89d   : > { %5675 = vmatpush3.msra.mxu1 %v5101_v53 }
 0x89e   : > { %5676 = vmatprep.subr.mxu1 %v5100_v55 }
 0x89f   : > { %5677 = vmatpush3.msra.mxu1 %v5100_v55 }
 0x8a0   : > { %5678 = vmatprep.subr.mxu1 %v5099_v57 }
 0x8a1   : > { %5679 = vmatpush3.msra.mxu1 %v5099_v57 }
 0x8a2   : > { %5680 = vmatprep.subr.mxu1 %v5098_v59 }
 0x8a3   : > { %5681 = vmatpush3.msra.mxu1 %v5098_v59 }
 0x8a4   : > { %5696 = vmatprep.subr.msk.mxu1 %vm1121_vm2, %v5110_v61 }
 0x954   : > { %v5640_v36 = vpop.f32.mrf.mxu1 }
 0x956   : > { %v2531_v37 = vpop.f32.mrf.mxu1 }
 0x957   : > { %5649 = vmatprep.mubr.msk.f32.mxu0 %vm939_vm3, %v2531_v37 }
 0x958   : > { %5650 = vmatmul.mubr.msk.f32.vlgmr.msra.gmra.mxu0 %vm939_vm3, %v5640_v36 }
 0x959   : > { %5664 = vmatpush3.msra.mxu0 %v2722_v38 }
 0x95a   : > { %5665 = vmatprep.subr.mxu0 %v2721_v39 }
 0x95b   : > { %5666 = vmatpush3.msra.mxu0 %v2721_v39 }
 0x95c   : > { %5667 = vmatprep.subr.mxu0 %v2720_v40  ;;  %v5662_v42 = vpop.f32.mrf.mxu1 }
 0x95d   : > { %5668 = vmatpush3.msra.mxu0 %v2720_v40 }
 0x95e   : > { %5669 = vmatprep.subr.mxu0 %v2719_v41  ;;  %v2697_v46 = vpop.f32.mrf.mxu1 }
 0x95f   : > { %5670 = vmatpush3.msra.mxu0 %v2719_v41 }
 0x960   : > { %5685 = vmatprep.subr.mxu0 %v5107_v54 }
 0xa18   : > { %v5651_v43 = vpop.f32.mrf.mxu0 }
 0xa19   : > { %v2703_v44 = vadd.f32 %v5662_v42, %v5651_v43 }
 0xa1a   : > { %v2622_v47 = vpop.f32.mrf.mxu0 }
 0xa1b   : > { %v2698_v48 = vadd.f32 %v2697_v46, %v2622_v47  ;;  %v2715_v49 = vadd.f32 %v5093_v45, %v2703_v44  ;;  %v3456_v46 = vld [vmem:[#allocation14 + $0x58] sm:$0xff]  ;;  %v3455_v47 = vld [vmem:[#allocation14 + $0x50] sm:$0xff] }
 0xa1d   : > { %v2714_v50 = vadd.f32 %v5093_v45, %v2698_v48  ;;  %v2717_v52 = vmax.f32 %v2715_v49, 0.0 }
 0xa1f   : > { %v2716_v51 = vmax.f32 %v2714_v50, 0.0  ;;  %v5126_v50 = vld [vmem:[%s7157_s12 + $0x2] ss:$0 sm:$0xff] }
 0xa21   : > { %5671 = vmatprep.mubr.msk.f32.mxu0 %vm939_vm3, %v2716_v51 }
 0xa22   : > { %5672 = vmatmul.mubr.msk.f32.vlgmr.msra.gmra.mxu0 %vm939_vm3, %v2717_v52 }
 0xa23   : > { %5686 = vmatpush3.msra.mxu0 %v5107_v54 }
 0xa24   : > { %5687 = vmatprep.subr.mxu0 %v5106_v56 }
 0xa25   : > { %5688 = vmatpush3.msra.mxu0 %v5106_v56 }
 0xa26   : > { %5689 = vmatprep.subr.mxu0 %v5105_v58 }
 0xa27   : > { %5690 = vmatpush3.msra.mxu0 %v5105_v58 }
 0xa28   : > { %5691 = vmatprep.subr.mxu0 %v5104_v60 }
 0xa29   : > { %5692 = vmatpush3.msra.mxu0 %v5104_v60 }
 0xae2   : > { %v5673_v63 = vpop.f32.mrf.mxu0 }
 0xae3   : > { %v2809_v0 = vadd.f32 %v5673_v63, %v5095_v62  ;;  %v3449_v63 = vld [vmem:[#allocation12 + $0x48] sm:$0xff] }
 0xae4   : > { %v2803_v1 = vpop.f32.mrf.mxu0 }
 0xae5   : > { %v2804_v2 = vadd.f32 %v5095_v62, %v2803_v1  ;;  %v2813_v3 = vmax.f32 %v2809_v0, 0.0  ;;  %v3450_v62 = vld [vmem:[#allocation12 + $0x50] sm:$0xff]  ;;  %v3448_v0 = vld [vmem:[#allocation12 + $0x40] sm:$0xff]  ;;  %v3454_v1 = vld [vmem:[#allocation14 + $0x48] sm:$0xff] }
 0xae7   : > { %v2812_v5 = vmax.f32 %v2804_v2, 0.0  ;;  %v6942_v7 = vadd.f32 %v2813_v3, %v6850_v12  ;;  %v3453_v2 = vld [vmem:[#allocation14 + $0x40] sm:$0xff] }
 0xae9   : > { %v6939_v6 = vadd.f32 %v2812_v5, %v6847_v11 }
 0xaeb   : > { %5682 = vmatprep.mubr.msk.f32.mxu1 %vm939_vm3, %v6939_v6  ;;  %5693 = vmatprep.mubr.msk.f32.mxu0 %vm939_vm3, %v6939_v6 }
 0xaec   : > { %5683 = vmatmul.mubr.msk.f32.vlgmr.msra.gmra.mxu1 %vm939_vm3, %v6942_v7  ;;  %5694 = vmatmul.mubr.msk.f32.vlgmr.msra.gmra.mxu0 %vm939_vm3, %v6942_v7 }
 0xaed   : > { %5697 = vmatpush3.msk.msra.mxu1 %vm1121_vm2, %v5110_v61  ;;  %5698 = vmatprep.mubr.msk.f32.mxu1 %vm1108_vm4, %v6707_v19  ;;  %v3451_v61 = vld [vmem:[#allocation12 + $0x58] sm:$0xff] }
 0xaee   : > { %5708 = vmatprep.mubr.msk.f32.mxu0 %vm1210_vm5, %v6746_v23  ;;  %v3259_v23 = vld [vmem:[#allocation11 + $0x40] sm:$0xff] }
 0xaf0   : > { %5699 = vmatmul.mubr.msk.f32.vlgmr.msra.gmra.mxu1 %vm1108_vm4, %v6721_v20  ;;  %v3262_v20 = vld [vmem:[#allocation11 + $0x58] sm:$0xff] }
 0xaf1   : > { %5701 = vmatprep.mubr.msk.f32.mxu1 %vm1108_vm4, %v6724_v21  ;;  %v3261_v21 = vld [vmem:[#allocation11 + $0x50] sm:$0xff] }
 0xaf4   : > { %5702 = vmatmul.mubr.msk.f32.gmra.mxu1 %vm1108_vm4, %v6731_v22  ;;  %v3260_v22 = vld [vmem:[#allocation11 + $0x48] sm:$0xff] }
 0xaf5   : > { %5718 = vmatprep.mubr.msk.f32.mxu1 %vm1210_vm5, %v6749_v24 }
 0xbac   : > { %v5684_v11 = vpop.f32.mrf.mxu1  ;;  %v5695_v12 = vpop.f32.mrf.mxu0 }
 0xbad   : > { %5704 = vmatprep.subr.mxu0 %v5695_v12  ;;  %5714 = vmatprep.subr.mxu1 %v5684_v11 }
 0xbae   : > { %v2893_v19 = vpop.f32.mrf.mxu1  ;;  %v2973_v8 = vpop.f32.mrf.mxu0  ;;  %5705 = vmatpush3.msra.mxu0 %v5695_v12  ;;  %5715 = vmatpush3.msra.mxu1 %v5684_v11  ;;  %v3629_v11 = vld [vmem:[#allocation15 + $0x58] sm:$0xff]  ;;  %v3628_v12 = vld [vmem:[#allocation15 + $0x50] sm:$0xff] }
 0xbaf   : > { %5706 = vmatprep.subr.mxu0 %v2973_v8  ;;  %5716 = vmatprep.subr.mxu1 %v2893_v19 }
 0xbb0   : > { %5707 = vmatpush3.msra.mxu0 %v2973_v8  ;;  %5717 = vmatpush3.msra.mxu1 %v2893_v19  ;;  %v5700_v24 = vpop.f32.mrf.mxu1  ;;  %v3627_v19 = vld [vmem:[#allocation15 + $0x48] sm:$0xff]  ;;  %v3626_v8 = vld [vmem:[#allocation15 + $0x40] sm:$0xff] }
 0xbb1   : > { %5709 = vmatmul.mubr.msk.f32.vlgmr.msra.gmra.mxu0 %vm1210_vm5, %v6769_v32  ;;  %5719 = vmatmul.mubr.msk.f32.vlgmr.msra.gmra.mxu1 %vm1210_vm5, %v6757_v25 }
 0xbb2   : > { %5711 = vmatprep.mubr.msk.f32.mxu0 %vm1210_vm5, %v6772_v33  ;;  %5721 = vmatprep.mubr.msk.f32.mxu1 %vm1210_vm5, %v6761_v26  ;;  %v3061_v25 = vpop.f32.mrf.mxu1 }
 0xbb3   : > { %5724 = vmatprep.subr.mxu0 %v3262_v20 }
 0xbb4   : > { %5725 = vmatpush3.msra.mxu0 %v3262_v20  ;;  %v5703_v26 = vpop.f32.mrf.mxu1 }
 0xbb5   : > { %5712 = vmatmul.mubr.msk.f32.gmra.mxu0 %vm1210_vm5, %v6783_v34  ;;  %5722 = vmatmul.mubr.msk.f32.gmra.mxu1 %vm1210_vm5, %v6765_v27  ;;  %v5111_v27 = vld [vmem:[#allocation9 + $0x2] ss:$0 sm:$0xff] }
 0xbb6   : > { %5746 = vmatprep.mubr.msk.f32.mxu1 %vm939_vm3, %v6793_v4  ;;  %5726 = vmatprep.subr.mxu0 %v3261_v21  ;;  %v3071_v32 = vpop.f32.mrf.mxu1  ;;  %v3067_v10 = vadd.f32 %v5700_v24, %v5111_v27  ;;  %v3062_v13 = vadd.f32 %v5111_v27, %v3061_v25  ;;  %v3077_v35 = vadd.f32 %v5703_v26, %v5111_v27 }
 0xbb7   : > { %5727 = vmatpush3.msra.mxu0 %v3261_v21  ;;  %v3072_v38 = vadd.f32 %v5111_v27, %v3071_v32 }
 0xbb8   : > { %5728 = vmatprep.subr.mxu0 %v3260_v22 }
 0xbb9   : > { %5729 = vmatpush3.msra.mxu0 %v3260_v22 }
 0xbba   : > { %5730 = vmatprep.subr.mxu0 %v3259_v23 }
 0xbbb   : > { %5731 = vmatpush3.msra.mxu0 %v3259_v23  ;;  %v5138_v23 = vld [vmem:[%s7160_s15 + $0x2] ss:$0 sm:$0xff] }
 0xbbc   : > { %5749 = vmatprep.subr.mxu0 %v3456_v46 }
 0xc71   : > { %v5710_v33 = vpop.f32.mrf.mxu0  ;;  %v5720_v34 = vpop.f32.mrf.mxu1 }
 0xc72   : > { %v3237_v9 = vadd.f32 %v5720_v34, %v5710_v33 }
 0xc73   : > { %v3146_v17 = vpop.f32.mrf.mxu0  ;;  %v3231_v18 = vpop.f32.mrf.mxu1 }
 0xc74   : > { %v3232_v14 = vadd.f32 %v3231_v18, %v3146_v17  ;;  %v3251_v15 = vadd.f32 %v3237_v9, %v3067_v10  ;;  %v5146_v9 = vld [vmem:[%s7152_s7 + $0x78] sm:$0xff]  ;;  %v5145_v17 = vld [vmem:[%s7152_s7 + $0x70] sm:$0xff] }
 0xc75   : > { %v5713_v16 = vpop.f32.mrf.mxu0  ;;  %v5723_v28 = vpop.f32.mrf.mxu1  ;;  %v5152_v10 = vld [vmem:[%s7153_s8 + $0x78] sm:$0xff]  ;;  %v5151_v18 = vld [vmem:[%s7153_s8 + $0x70] sm:$0xff] }
 0xc76   : > { %v3250_v29 = vadd.f32 %v3232_v14, %v3062_v13  ;;  %v3247_v30 = vadd.f32 %v5723_v28, %v5713_v16  ;;  %v3255_v41 = vmax.f32 %v3251_v15, 0.0  ;;  %v5144_v13 = vld [vmem:[%s7152_s7 + $0x68] sm:$0xff]  ;;  %v5143_v15 = vld [vmem:[%s7152_s7 + $0x60] sm:$0xff] }
 0xc77   : > { %v3156_v36 = vpop.f32.mrf.mxu0  ;;  %v3241_v37 = vpop.f32.mrf.mxu1  ;;  %v5150_v14 = vld [vmem:[%s7153_s8 + $0x68] sm:$0xff]  ;;  %v5149_v16 = vld [vmem:[%s7153_s8 + $0x60] sm:$0xff] }
 0xc78   : > { %v3254_v39 = vmax.f32 %v3250_v29, 0.0  ;;  %v3242_v40 = vadd.f32 %v3241_v37, %v3156_v36  ;;  %v3253_v42 = vadd.f32 %v3247_v30, %v3077_v35  ;;  %v5155_v28 = vld [vmem:[%s7154_s9 + $0xc] sm:$0xf]  ;;  %v5140_v29 = vld [vmem:[%s7162_s17 + $0x2] ss:$0 sm:$0xff] }
 0xc7a   : > { %v3252_v43 = vadd.f32 %v3242_v40, %v3072_v38  ;;  %5732 = vmatprep.mubr.msk.f32.mxu0 %vm939_vm3, %v3254_v39  ;;  %v3257_v45 = vmax.f32 %v3253_v42, 0.0  ;;  %v6030_v42 = vld [vmem:[%s6700_s27 + $0x8] sm:$0xff] }
 0xc7b   : > { %5733 = vmatmul.mubr.msk.f32.vlgmr.msra.gmra.mxu0 %vm939_vm3, %v3255_v41 }
 0xc7c   : > { %v3256_v44 = vmax.f32 %v3252_v43, 0.0  ;;  %5750 = vmatpush3.msra.mxu0 %v3456_v46  ;;  %v6031_v43 = vld [vmem:[%s6700_s27 + $0x10] sm:$0xff] }
 0xc7d   : > { %5751 = vmatprep.subr.mxu0 %v3455_v47 }
 0xc7e   : > { %5735 = vmatprep.mubr.msk.f32.mxu0 %vm939_vm3, %v3256_v44  ;;  %5752 = vmatpush3.msra.mxu0 %v3455_v47  ;;  %v6032_v44 = vld [vmem:[%s6700_s27 + $0x18] sm:$0xff] }
 0xc7f   : > { %5736 = vmatmul.mubr.msk.f32.gmra.mxu0 %vm939_vm3, %v3257_v45  ;;  %5753 = vmatprep.subr.mxu0 %v3454_v1  ;;  %v6033_v45 = vld [vmem:[%s6738_s30] sm:$0xff] }
 0xc80   : > { %5754 = vmatpush3.msra.mxu0 %v3454_v1 }
 0xc81   : > { %5755 = vmatprep.subr.mxu0 %v3453_v2 }
 0xc82   : > { %5756 = vmatpush3.msra.mxu0 %v3453_v2 }
 0xc83   : > { %5771 = vmatprep.subr.mxu0 %v3629_v11 }
 0xd3b   : > { %v5734_v48 = vpop.f32.mrf.mxu0 }
 0xd3c   : > { %v3355_v54 = vadd.f32 %v5734_v48, %v5126_v50 }
 0xd3d   : > { %v3349_v49 = vpop.f32.mrf.mxu0 }
 0xd3e   : > { %v3350_v57 = vadd.f32 %v5126_v50, %v3349_v49  ;;  %v3369_v59 = vmax.f32 %v3355_v54, 0.0  ;;  %v6038_v54 = vld [vmem:[%s6743_s20 + $0x18] sm:$0xff] }
 0xd3f   : > { %v5737_v51 = vpop.f32.mrf.mxu0 }
 0xd40   : > { %v3365_v52 = vadd.f32 %v5737_v51, %v5126_v50  ;;  %v3368_v60 = vmax.f32 %v3350_v57, 0.0  ;;  %v6035_v51 = vld [vmem:[%s6738_s30 + $0x8] sm:$0xff] }
 0xd41   : > { %v3359_v53 = vpop.f32.mrf.mxu0  ;;  %v4168_v57 = vld [vmem:[#allocation11 + $0x70] sm:$0xff] }
 0xd42   : > { %v3371_v55 = vmax.f32 %v3365_v52, 0.0  ;;  %v3360_v56 = vadd.f32 %v5126_v50, %v3359_v53  ;;  %v6034_v50 = vld [vmem:[%s6743_s20 + $0x8] sm:$0xff]  ;;  %v6036_v52 = vld [vmem:[%s6743_s20 + $0x10] sm:$0xff] }
 0xd43   : > { %v6037_v53 = vld [vmem:[%s6738_s30 + $0x10] sm:$0xff] }
 0xd44   : > { %v3370_v58 = vmax.f32 %v3360_v56, 0.0  ;;  %5738 = vmatprep.subr.mxu1 %v3371_v55  ;;  %v4169_v56 = vld [vmem:[#allocation11 + $0x78] sm:$0xff] }
 0xd45   : > { %5739 = vmatpush3.msra.mxu1 %v3371_v55  ;;  %v6039_v55 = vld [vmem:[%s6738_s30 + $0x18] sm:$0xff]  ;;  %s4794_s30 = scalar_lea.sflag [#allocation5], %s6634_s13 }
 0xd46   : > { %5740 = vmatprep.subr.mxu1 %v3370_v58 }
 0xd47   : > { %5741 = vmatpush3.msra.mxu1 %v3370_v58  ;;  %v4167_v58 = vld [vmem:[#allocation11 + $0x68] sm:$0xff] }
 0xd48   : > { %5742 = vmatprep.subr.mxu1 %v3369_v59 }
 0xd49   : > { %5743 = vmatpush3.msra.mxu1 %v3369_v59  ;;  %v4166_v59 = vld [vmem:[#allocation11 + $0x60] sm:$0xff] }
 0xd4a   : > { %5744 = vmatprep.subr.mxu1 %v3368_v60 }
 0xd4b   : > { %5745 = vmatpush3.msra.mxu1 %v3368_v60 }
 0xd4c   : > { %5747 = vmatmul.mubr.msk.f32.vlgmr.msra.gmra.mxu1 %vm939_vm3, %v6800_v31  ;;  %5760 = vmatprep.subr.mxu1 %v3451_v61 }
 0xd4d   : > { %5761 = vmatpush3.msra.mxu1 %v3451_v61  ;;  %5768 = vmatprep.mubr.msk.f32.mxu1 %vm939_vm3, %v6939_v6 }
 0xd4e   : > { %5762 = vmatprep.subr.mxu1 %v3450_v62 }
 0xd4f   : > { %5763 = vmatpush3.msra.mxu1 %v3450_v62 }
 0xd50   : > { %5764 = vmatprep.subr.mxu1 %v3449_v63 }
 0xd51   : > { %5765 = vmatpush3.msra.mxu1 %v3449_v63 }
 0xd52   : > { %5766 = vmatprep.subr.mxu1 %v3448_v0 }
 0xd53   : > { %5767 = vmatpush3.msra.mxu1 %v3448_v0  ;;  %v5156_v0 = vld [vmem:[#allocation9 + $0x3] ss:$0 sm:$0xff] }
 0xd54   : > { %5769 = vmatmul.mubr.msk.f32.vlgmr.msra.gmra.mxu1 %vm939_vm3, %v6942_v7  ;;  %5782 = vmatprep.subr.mxu1 %v5146_v9 }
 0xd55   : > { %5783 = vmatpush3.msra.mxu1 %v5146_v9 }
 0xd56   : > { %5784 = vmatprep.subr.mxu1 %v5145_v17 }
 0xd57   : > { %5785 = vmatpush3.msra.mxu1 %v5145_v17 }
 0xd58   : > { %5786 = vmatprep.subr.mxu1 %v5144_v13 }
 0xd59   : > { %5787 = vmatpush3.msra.mxu1 %v5144_v13  ;;  %v4363_v13 = vld [vmem:[#allocation14 + $0x78] sm:$0xff] }
 0xd5a   : > { %5788 = vmatprep.subr.mxu1 %v5143_v15 }
 0xd5b   : > { %5789 = vmatpush3.msra.mxu1 %v5143_v15 }
 0xd5c   : > { %5804 = vmatprep.subr.msk.mxu1 %vm1121_vm2, %v5155_v28 }
 0xe0c   : > { %v5748_v3 = vpop.f32.mrf.mxu1 }
 0xe0e   : > { %v3438_v5 = vpop.f32.mrf.mxu1 }
 0xe0f   : > { %5757 = vmatprep.mubr.msk.f32.mxu0 %vm939_vm3, %v3438_v5 }
 0xe10   : > { %5758 = vmatmul.mubr.msk.f32.vlgmr.msra.gmra.mxu0 %vm939_vm3, %v5748_v3 }
 0xe11   : > { %5772 = vmatpush3.msra.mxu0 %v3629_v11 }
 0xe12   : > { %5773 = vmatprep.subr.mxu0 %v3628_v12 }
 0xe13   : > { %5774 = vmatpush3.msra.mxu0 %v3628_v12 }
 0xe14   : > { %5775 = vmatprep.subr.mxu0 %v3627_v19  ;;  %v5770_v20 = vpop.f32.mrf.mxu1 }
 0xe15   : > { %5776 = vmatpush3.msra.mxu0 %v3627_v19 }
 0xe16   : > { %5777 = vmatprep.subr.mxu0 %v3626_v8  ;;  %v3604_v24 = vpop.f32.mrf.mxu1 }
 0xe17   : > { %5778 = vmatpush3.msra.mxu0 %v3626_v8 }
 0xe18   : > { %5793 = vmatprep.subr.mxu0 %v5152_v10 }
 0xed0   : > { %v5759_v21 = vpop.f32.mrf.mxu0 }
 0xed1   : > { %v3610_v22 = vadd.f32 %v5770_v20, %v5759_v21 }
 0xed2   : > { %v3529_v25 = vpop.f32.mrf.mxu0 }
 0xed3   : > { %v3605_v26 = vadd.f32 %v3604_v24, %v3529_v25  ;;  %v3622_v32 = vadd.f32 %v5138_v23, %v3610_v22 }
 0xed5   : > { %v3621_v27 = vadd.f32 %v5138_v23, %v3605_v26  ;;  %v3624_v34 = vmax.f32 %v3622_v32, 0.0 }
 0xed7   : > { %v3623_v33 = vmax.f32 %v3621_v27, 0.0 }
 0xed9   : > { %5779 = vmatprep.mubr.msk.f32.mxu0 %vm939_vm3, %v3623_v33 }
 0xeda   : > { %5780 = vmatmul.mubr.msk.f32.vlgmr.msra.gmra.mxu0 %vm939_vm3, %v3624_v34 }
 0xedb   : > { %5794 = vmatpush3.msra.mxu0 %v5152_v10 }
 0xedc   : > { %5795 = vmatprep.subr.mxu0 %v5151_v18 }
 0xedd   : > { %5796 = vmatpush3.msra.mxu0 %v5151_v18 }
 0xede   : > { %5797 = vmatprep.subr.mxu0 %v5150_v14 }
 0xedf   : > { %5798 = vmatpush3.msra.mxu0 %v5150_v14  ;;  %v4362_v14 = vld [vmem:[#allocation14 + $0x70] sm:$0xff] }
 0xee0   : > { %5799 = vmatprep.subr.mxu0 %v5149_v16 }
 0xee1   : > { %5800 = vmatpush3.msra.mxu0 %v5149_v16 }
 0xf9a   : > { %v5781_v30 = vpop.f32.mrf.mxu0 }
 0xf9b   : > { %v3716_v35 = vadd.f32 %v5781_v30, %v5140_v29 }
 0xf9c   : > { %v3710_v36 = vpop.f32.mrf.mxu0 }
 0xf9d   : > { %v3711_v37 = vadd.f32 %v5140_v29, %v3710_v36  ;;  %v3720_v38 = vmax.f32 %v3716_v35, 0.0 }
 0xf9f   : > { %v3719_v39 = vmax.f32 %v3711_v37, 0.0  ;;  %v7034_v41 = vadd.f32 %v3720_v38, %v6942_v7  ;;  %v6029_v7 = vld [vmem:[%s6743_s20] sm:$0xff]  ;;  %s6250_s20 = scalar_lea.vmem %s4807_s14, 16 }
 0xfa0   : > { %p6251_p11 = scmp.ne.s32.totalorder %s4807_s14, %s6250_s20 }
 0xfa1   : > { %v7031_v40 = vadd.f32 %v3719_v39, %v6939_v6  ;;  %v6028_v6 = vld [vmem:[%s6700_s27] sm:$0xff] }
 0xfa2   : > { %p6252_p3 = pnand %p6251_p11, %p7219_p1 }
 0xfa3   : > { %5790 = vmatprep.mubr.msk.f32.mxu1 %vm939_vm3, %v7031_v40  ;;  %5801 = vmatprep.mubr.msk.f32.mxu0 %vm939_vm3, %v7031_v40 }
 0xfa4   : > { %5791 = vmatmul.mubr.msk.f32.vlgmr.msra.gmra.mxu1 %vm939_vm3, %v7034_v41  ;;  %5802 = vmatmul.mubr.msk.f32.vlgmr.msra.gmra.mxu0 %vm939_vm3, %v7034_v41  ;;  %p6253_p4 = pneg %p6252_p3 }
 0xfa5   : > { %5805 = vmatpush3.msk.msra.mxu1 %vm1121_vm2, %v5155_v28  ;;  %5806 = vmatprep.mubr.msk.f32.mxu1 %vm1108_vm4, %v6028_v6  ;;  %v5171_v28 = vld [vmem:[%s7157_s12 + $0x3] ss:$0 sm:$0xff] }
 0xfa6   : > { %5816 = vmatprep.mubr.msk.f32.mxu0 %vm1210_vm5, %v6029_v7 }
 0xfa8   : > { %5807 = vmatmul.mubr.msk.f32.vlgmr.msra.gmra.mxu1 %vm1108_vm4, %v6030_v42 }
 0xfa9   : > { %5809 = vmatprep.mubr.msk.f32.mxu1 %vm1108_vm4, %v6031_v43  ;;  %v4358_v43 = vld [vmem:[#allocation12 + $0x78] sm:$0xff] }
 0xfac   : > { %5810 = vmatmul.mubr.msk.f32.gmra.mxu1 %vm1108_vm4, %v6032_v44  ;;  %v4357_v44 = vld [vmem:[#allocation12 + $0x70] sm:$0xff] }
 0xfad   : > { %5826 = vmatprep.mubr.msk.f32.mxu1 %vm1210_vm5, %v6033_v45  ;;  %v4356_v45 = vld [vmem:[#allocation12 + $0x68] sm:$0xff] }
0x1064   : > { %v5792_v46 = vpop.f32.mrf.mxu1  ;;  %v5803_v47 = vpop.f32.mrf.mxu0 }
0x1065   : > { %5812 = vmatprep.subr.mxu0 %v5803_v47  ;;  %5822 = vmatprep.subr.mxu1 %v5792_v46 }
0x1066   : > { %v3800_v48 = vpop.f32.mrf.mxu1  ;;  %v3880_v49 = vpop.f32.mrf.mxu0  ;;  %5813 = vmatpush3.msra.mxu0 %v5803_v47  ;;  %5823 = vmatpush3.msra.mxu1 %v5792_v46  ;;  %v4355_v46 = vld [vmem:[#allocation12 + $0x60] sm:$0xff]  ;;  %v4361_v47 = vld [vmem:[#allocation14 + $0x68] sm:$0xff] }
0x1067   : > { %5814 = vmatprep.subr.mxu0 %v3880_v49  ;;  %5824 = vmatprep.subr.mxu1 %v3800_v48 }
0x1068   : > { %5815 = vmatpush3.msra.mxu0 %v3880_v49  ;;  %5825 = vmatpush3.msra.mxu1 %v3800_v48  ;;  %v5808_v60 = vpop.f32.mrf.mxu1 }
0x1069   : > { %5817 = vmatmul.mubr.msk.f32.vlgmr.msra.gmra.mxu0 %vm1210_vm5, %v6034_v50  ;;  %5827 = vmatmul.mubr.msk.f32.vlgmr.msra.gmra.mxu1 %vm1210_vm5, %v6035_v51  ;;  %v3974_v3 = vadd.f32 %v5808_v60, %v5156_v0  ;;  %v4536_v50 = vld [vmem:[#allocation15 + $0x78] sm:$0xff]  ;;  %v4535_v51 = vld [vmem:[#allocation15 + $0x70] sm:$0xff] }
0x106a   : > { %5819 = vmatprep.mubr.msk.f32.mxu0 %vm1210_vm5, %v6036_v52  ;;  %5829 = vmatprep.mubr.msk.f32.mxu1 %vm1210_vm5, %v6037_v53  ;;  %v3968_v61 = vpop.f32.mrf.mxu1  ;;  %v4534_v52 = vld [vmem:[#allocation15 + $0x68] sm:$0xff]  ;;  %v4533_v53 = vld [vmem:[#allocation15 + $0x60] sm:$0xff] }
0x106b   : > { %5832 = vmatprep.subr.mxu0 %v4169_v56  ;;  %v3969_v12 = vadd.f32 %v5156_v0, %v3968_v61 }
0x106c   : > { %5833 = vmatpush3.msra.mxu0 %v4169_v56  ;;  %v5811_v62 = vpop.f32.mrf.mxu1 }
0x106d   : > { %5820 = vmatmul.mubr.msk.f32.gmra.mxu0 %vm1210_vm5, %v6038_v54  ;;  %5830 = vmatmul.mubr.msk.f32.gmra.mxu1 %vm1210_vm5, %v6039_v55  ;;  %v3984_v24 = vadd.f32 %v5811_v62, %v5156_v0 }
0x106e   : > { %5854 = vmatprep.mubr.msk.f32.mxu1 %vm939_vm3, %v6793_v4  ;;  %5834 = vmatprep.subr.mxu0 %v4168_v57  ;;  %v3978_v63 = vpop.f32.mrf.mxu1 }
0x106f   : > { %5835 = vmatpush3.msra.mxu0 %v4168_v57  ;;  %v3979_v32 = vadd.f32 %v5156_v0, %v3978_v63  ;;  %v5183_v57 = vld [vmem:[%s7160_s15 + $0x3] ss:$0 sm:$0xff] }
0x1070   : > { %5836 = vmatprep.subr.mxu0 %v4167_v58 }
0x1071   : > { %5837 = vmatpush3.msra.mxu0 %v4167_v58 }
0x1072   : > { %5838 = vmatprep.subr.mxu0 %v4166_v59 }
0x1073   : > { %5839 = vmatpush3.msra.mxu0 %v4166_v59 }
0x1074   : > { %5857 = vmatprep.subr.mxu0 %v4363_v13 }
0x1129   : > { %v5818_v1 = vpop.f32.mrf.mxu0  ;;  %v5828_v2 = vpop.f32.mrf.mxu1 }
0x112a   : > { %v4144_v4 = vadd.f32 %v5828_v2, %v5818_v1  ;;  %v6344_v1 = vmov 0.0   ;;  %v5185_v2 = vld [vmem:[%s7162_s17 + $0x3] ss:$0 sm:$0xff] }
0x112b   : > { %v4053_v5 = vpop.f32.mrf.mxu0  ;;  %v4138_v11 = vpop.f32.mrf.mxu1 }
0x112c   : > { %v4139_v19 = vadd.f32 %v4138_v11, %v4053_v5  ;;  %v4158_v8 = vadd.f32 %v4144_v4, %v3974_v3 }
0x112d   : > { %v5821_v20 = vpop.f32.mrf.mxu0  ;;  %v5831_v21 = vpop.f32.mrf.mxu1 }
0x112e   : > { %v4157_v22 = vadd.f32 %v4139_v19, %v3969_v12  ;;  %v4154_v23 = vadd.f32 %v5831_v21, %v5821_v20  ;;  %v4162_v34 = vmax.f32 %v4158_v8, 0.0  ;;  %v4630_v21 = vld [vmem:[%s6638_s16] sm:$0x3]  ;;  %s5191_s16 = sshll.u32 %s6477_s26, 4  ;;  %s6347_s26 = smov [#allocation17]  }
0x112f   : > { %v4063_v25 = vpop.f32.mrf.mxu0  ;;  %v4148_v26 = vpop.f32.mrf.mxu1  ;;  %s7108_s27 = scalar_lea.hbm %s7218_s10, %s5191_s16  ;;  %s6254_s0 = sshll.u32 %s6347_s26, 4  ;;  %s6255_s0 = int_to_ptr.vmem [resolvable:$false] %s6254_s0 }
0x1130   : > { %v4161_v27 = vmax.f32 %v4157_v22, 0.0  ;;  %v4149_v33 = vadd.f32 %v4148_v26, %v4063_v25  ;;  %v4160_v9 = vadd.f32 %v4154_v23, %v3984_v24  ;;  %v4705_v22 = vld [vmem:[#allocation2] sm:$0x1]  ;;  %v6346_v23 = vmov 0   ;;  %s6256_s28 = scalar_lea.vmem %s6255_s0, 32  ;;  %p6257_p7 = scmp.lt.s32.totalorder %s4807_s14, %s6255_s0 }
0x1131   : > { %6026 = vset.pattern.permute.xlu1 %v6346_v23  ;;  %6027 = vset.pattern.permute.xlu0 %v6346_v23  ;;  %v4711_v25 = vlaneseq  ;;  %p6258_p9 = scmp.lt.s32.totalorder %s6256_s28, %s6250_s20 }
0x1132   : > { %v4159_v10 = vadd.f32 %v4149_v33, %v3979_v32  ;;  %5840 = vmatprep.mubr.msk.f32.mxu0 %vm939_vm3, %v4161_v27  ;;  %v4164_v18 = vmax.f32 %v4160_v9, 0.0  ;;  %4708 = vperm.xlu1 %6026, %v4705_v22  }
0x1133   : > { %5841 = vmatmul.mubr.msk.f32.vlgmr.msra.gmra.mxu0 %vm939_vm3, %v4162_v34  ;;  %v4712_v26 = vshrl.u32 %v4711_v25, 7  ;;  %p6259_p6 = por %p6258_p9, %p6257_p7 }
0x1134   : > { %v4163_v17 = vmax.f32 %v4159_v10, 0.0  ;;  %5858 = vmatpush3.msra.mxu0 %v4363_v13 }
0x1135   : > { %5859 = vmatprep.subr.mxu0 %v4362_v14  ;;  %v4713_v32 = vsub.s32 0, %v4712_v26  ;;  %p6260_p12 = pnand %p6259_p6, %p6253_p4 }
0x1136   : > { %5843 = vmatprep.mubr.msk.f32.mxu0 %vm939_vm3, %v4163_v17  ;;  %5860 = vmatpush3.msra.mxu0 %v4362_v14 }
0x1137   : > { %5844 = vmatmul.mubr.msk.f32.gmra.mxu0 %vm939_vm3, %v4164_v18  ;;  %5861 = vmatprep.subr.mxu0 %v4361_v47 }
0x1138   : > { %5862 = vmatpush3.msra.mxu0 %v4361_v47 }
0x11ad   : > { %v4709_v27 = vpop.permute.xlu1 %4708 }
0x11ae   : > { %v4714_v33 = vrot.slane %v4709_v27, %v4713_v32 }
0x11f3   : > { %v5842_v15 = vpop.f32.mrf.mxu0 }
0x11f4   : > { %v4262_v36 = vadd.f32 %v5842_v15, %v5171_v28 }
0x11f5   : > { %v4256_v16 = vpop.f32.mrf.mxu0 }
0x11f6   : > { %v4257_v39 = vadd.f32 %v5171_v28, %v4256_v16  ;;  %v4276_v7 = vmax.f32 %v4262_v36, 0.0 }
0x11f7   : > { %v5845_v29 = vpop.f32.mrf.mxu0 }
0x11f8   : > { %v4272_v30 = vadd.f32 %v5845_v29, %v5171_v28  ;;  %v4275_v42 = vmax.f32 %v4257_v39, 0.0 }
0x11f9   : > { %v4266_v35 = vpop.f32.mrf.mxu0 }
0x11fa   : > { %v4278_v37 = vmax.f32 %v4272_v30, 0.0  ;;  %v4267_v38 = vadd.f32 %v5171_v28, %v4266_v35 }
0x11fc   : > { %v4277_v6 = vmax.f32 %v4267_v38, 0.0  ;;  %5846 = vmatprep.subr.mxu1 %v4278_v37 }
0x11fd   : > { %5847 = vmatpush3.msra.mxu1 %v4278_v37 }
0x11fe   : > { %5848 = vmatprep.subr.mxu1 %v4277_v6 }
0x11ff   : > { %5849 = vmatpush3.msra.mxu1 %v4277_v6 }
0x1200   : > { %5850 = vmatprep.subr.mxu1 %v4276_v7 }
0x1201   : > { %5851 = vmatpush3.msra.mxu1 %v4276_v7 }
0x1202   : > { %5852 = vmatprep.subr.mxu1 %v4275_v42 }
0x1203   : > { %5853 = vmatpush3.msra.mxu1 %v4275_v42 }
0x1204   : > { %5855 = vmatmul.mubr.msk.f32.vlgmr.msra.gmra.mxu1 %vm939_vm3, %v6800_v31  ;;  %5868 = vmatprep.subr.mxu1 %v4358_v43  ;;  %v4360_v31 = vld [vmem:[#allocation14 + $0x60] sm:$0xff] }
0x1205   : > { %5869 = vmatpush3.msra.mxu1 %v4358_v43  ;;  %5876 = vmatprep.mubr.msk.f32.mxu1 %vm939_vm3, %v7031_v40 }
0x1206   : > { %5870 = vmatprep.subr.mxu1 %v4357_v44  ;;  %5863 = vmatprep.subr.mxu0 %v4360_v31 }
0x1207   : > { %5871 = vmatpush3.msra.mxu1 %v4357_v44  ;;  %5864 = vmatpush3.msra.mxu0 %v4360_v31 }
0x1208   : > { %5872 = vmatprep.subr.mxu1 %v4356_v45  ;;  %5879 = vmatprep.subr.mxu0 %v4536_v50 }
0x1209   : > { %5873 = vmatpush3.msra.mxu1 %v4356_v45 }
0x120a   : > { %5874 = vmatprep.subr.mxu1 %v4355_v46 }
0x120b   : > { %5875 = vmatpush3.msra.mxu1 %v4355_v46 }
0x120c   : > { %5877 = vmatmul.mubr.msk.f32.vlgmr.msra.gmra.mxu1 %vm939_vm3, %v7034_v41  ;;  %5890 = vmatprep.subr.mxu1 %v6344_v1 }
0x120d   : > { %5894 = vmatprep.mubr.msk.f32.mxu1 %vm6345_vm6, %v6344_v1 }
0x12c4   : > { %v5856_v48 = vpop.f32.mrf.mxu1 }
0x12c6   : > { %v4345_v49 = vpop.f32.mrf.mxu1 }
0x12c7   : > { %5865 = vmatprep.mubr.msk.f32.mxu0 %vm939_vm3, %v4345_v49 }
0x12c8   : > { %5866 = vmatmul.mubr.msk.f32.vlgmr.msra.gmra.mxu0 %vm939_vm3, %v5856_v48 }
0x12c9   : > { %5880 = vmatpush3.msra.mxu0 %v4536_v50 }
0x12ca   : > { %5881 = vmatprep.subr.mxu0 %v4535_v51 }
0x12cb   : > { %5882 = vmatpush3.msra.mxu0 %v4535_v51 }
0x12cc   : > { %5883 = vmatprep.subr.mxu0 %v4534_v52  ;;  %v5878_v54 = vpop.f32.mrf.mxu1 }
0x12cd   : > { %5884 = vmatpush3.msra.mxu0 %v4534_v52 }
0x12ce   : > { %5885 = vmatprep.subr.mxu0 %v4533_v53  ;;  %v4511_v58 = vpop.f32.mrf.mxu1 }
0x12cf   : > { %5886 = vmatpush3.msra.mxu0 %v4533_v53 }
0x12d0   : > { %5897 = vmatprep.subr.mxu0 %v6344_v1 }
0x1388   : > { %v5867_v55 = vpop.f32.mrf.mxu0 }
0x1389   : > { %v4517_v56 = vadd.f32 %v5878_v54, %v5867_v55 }
0x138a   : > { %v4436_v59 = vpop.f32.mrf.mxu0 }
0x138b   : > { %v4512_v60 = vadd.f32 %v4511_v58, %v4436_v59  ;;  %v4529_v61 = vadd.f32 %v5183_v57, %v4517_v56 }
0x138d   : > { %v4528_v62 = vadd.f32 %v5183_v57, %v4512_v60  ;;  %v4531_v0 = vmax.f32 %v4529_v61, 0.0 }
0x138f   : > { %v4530_v63 = vmax.f32 %v4528_v62, 0.0 }
0x1391   : > { %5887 = vmatprep.mubr.msk.f32.mxu0 %vm939_vm3, %v4530_v63 }
0x1392   : > { %5888 = vmatmul.mubr.msk.f32.vlgmr.msra.gmra.mxu0 %vm939_vm3, %v4531_v0 }
0x1393   : > { %5899 = vmatprep.mubr.msk.f32.mxu0 %vm6345_vm6, %v6344_v1 }
0x1452   : > { %v5889_v4 = vpop.f32.mrf.mxu0 }
0x1453   : > { %v4623_v3 = vadd.f32 %v5889_v4, %v5185_v2 }
0x1454   : > { %v4617_v5 = vpop.f32.mrf.mxu0 }
0x1455   : > { %v4627_v11 = vmax.f32 %v4623_v3, 0.0  ;;  %v4618_v12 = vadd.f32 %v5185_v2, %v4617_v5 }
0x1457   : > { %v4629_v19 = vadd.f32 %v4627_v11, %v7034_v41  ;;  %v4626_v8 = vmax.f32 %v4618_v12, 0.0 }
0x1459   : > { %v4628_v20 = vadd.f32 %v4626_v8, %v7031_v40  ;;  %5891 = vmatpush3.msra.mxu1 %v4629_v19  ;;  %v4704_v40 = vld [vmem:[%s7217_s6] sm:$0x1] }
0x145a   : > { %5892 = vmatprep.subr.mxu1 %v6344_v1 }
0x145b   : > { %5893 = vmatpush3.msra.mxu1 %v4628_v20 }
0x145c   : > { %5895 = vmatmul.mubr.msk.f32.vlgmr.msra.gmra.mxu1 %vm1210_vm5, %v4630_v21 }
0x151c   : > { %v4700_v24 = vpop.f32.mrf.mxu1 }
0x151d   : > { %5898 = vmatpush3.xpose.msk.msra.mxu0 %vm939_vm3, %v4700_v24 }
0x151e   : > { %v5896_v41 = vpop.f32.mrf.mxu1 }
0x1520   : > { %5900 = vmatmul.mubr.msk.f32.vlgmr.msra.gmra.mxu0 %vm939_vm3, %v4704_v40 }
0x15e0   : > { %v4787_v34 = vpop.f32.mrf.mxu0 }
0x15e1   : > { %v4788_v9 = vadd.f32 %v4787_v34, %v4714_v33 }
0x15e2   : > { %v5901_v10 = vpop.f32.mrf.mxu0 }
0x15e3   : > { %4792 = vst.msk [vmem:[%s805_s19] sm:$0x1] %vm4791_vm7, %v4788_v9 }
0x15e4   : > { %6263 = shalt.err (!%p6260_p12)
}
0x15e5   : > { %s6264_s29 = scalar_lea.hbm %s7108_s27, 16  ;;  %s6268_s4 = scalar_lea.hbm %s7218_s10, 32 }
0x15e6   : > { %p6265_p13 = scmp.ne.s32.totalorder %s7108_s27, %s6264_s29  ;;  %p6269_p5 = scmp.lt.s32.totalorder %s7108_s27, %s7218_s10 }
0x15e7   : > { %p6270_p8 = scmp.lt.s32.totalorder %s6268_s4, %s6264_s29 }
0x15e8   : > { %p6266_p0 = pnand %p6265_p13, %p7219_p1 }
0x15e9   : > { %p6271_p10 = por %p6270_p8, %p6269_p5 }
0x15ea   : > { %p6267_p2 = pneg %p6266_p0 }
0x15ec   : > { %p6272_p11 = pnand %p6271_p10, %p6267_p2 }
0x15ee   : > { %6275 = shalt.err (!%p6272_p11)
}
0x15ef   : > { %5932 = dma.vmem_to_hbm [thread:$0]  (%p7219_p1), %s4807_s14, 16, %s7108_s27, %s4794_s30  }
0x15f0 PF: > { %s4818_s19 = sand.u32 1, %s6318_s23   ;;  %p7220_p3 = scmp.ne.s32.totalorder %s7200_s5, 0 }
0x15f1   : > { %p7221_p4 = scmp.ge.s32.totalorder %s6330_s25, 2  ;;  %s4819_s18 = scalar_lea.sflag [#allocation5], %s4818_s19 }
0x15f3   : > { %p5961_p7 = pnand %p7221_p4, %p7220_p3 }
0x15f5   : > { %p5962_p9 = pneg %p5961_p7 }
0x15f7   : > { %6313 = dma.done.wait (%p5962_p9), %s4819_s18, 16  }
0x15f8   : > { %6315 = vsyncadd (%p5962_p9), %s4819_s18, 4294967280  ;;  %s7222_s11 = sld [smem:[#allocation24_spill]]  ;;  %p39_p6 = scmp.ge.s32.totalorder %s6577_s21, 4  }
0x15f9   : > { %s7223_s23 = smov %s6322_s24  ;;  %s7224_s24 = smov %s6326_s2 }
0x15fa   : > { %s7226_s25 = smov %s6577_s21  ;;  %41 = sbr.rel (!%p39_p6) target bundleno = 24 (0x18), region = 218 }
0x15fe   : > { %s7225_s2 = smov %s7222_s11 }
0x15ff   :  { %4823 = vsyncpa [#allocation4], 1 }
0x1600   :  { %4825 = vsyncpa [#allocation4 + $0x1], 1 }
0x1601   :  { %4826 = vsyncpa [#allocation7], 1 }
0x1602   :  { %4827 = vsyncpa [#allocation10], 1 }
0x1603   :  { %4828 = vsyncpa [#allocation13], 1 }
0x1604   :  { %4829 = vsyncpa [#allocation16], 1 }
0x1605   :  { %4830 = vsyncpa [#allocation5], 1 }
0x1606   :  { %4832 = vsyncpa [#allocation5 + $0x1], 1 }

</bundles_post_ra>
